<compile_context>
chip_gen: v6e
topology: v6e:2x2x1
jax: 0.10.0
libtpu: 0.0.40
codegen_flags: <defaults>
</compile_context>

<pallas_src>
import jax
import jax.numpy as jnp
import numpy as np
from jax.experimental import pallas as pl
from jax.experimental.pallas import tpu as pltpu

HIDDEN = 128
OUT = 8


def _lstm_fc_kernel(x_ref, wih_ref, whh_ref, b_ref, wfc_ref, bfc_ref,
                    out_ref, xp_ref):
    # Shapes recovered from the refs (all static).
    B, T, fourH = xp_ref.shape
    H = HIDDEN

    # ---- Phase 1 (once): hoisted input projection for all time steps. ----
    # x_ref is the batch-first input flattened to (B*T, I); row b*T + t is
    # (batch b, time t).  One MXU matmul replaces T per-step matmuls.
    xp = jnp.dot(x_ref[...], wih_ref[...],
                 preferred_element_type=jnp.float32) + b_ref[...]   # (B*T, 4H)
    # (B*T, 4H) -> (B, T, 4H): pure layout reinterpretation (lane dim 4H
    # unchanged), stored in VMEM scratch so the unrolled loop below only
    # loads one (B, 4H) slab per step (keeps register pressure bounded).
    xp_ref[...] = xp.reshape(B, T, fourH)

    whh = whh_ref[...]                                              # (H, 4H)

    # ---- Phase 2: serial recurrence, fully unrolled (T is static). -------
    # A static Python loop is equivalent to lax.fori_loop(..., unroll=True)
    # here and gives static slice indices into the scratch.
    h = jnp.zeros((B, H), jnp.float32)
    c = jnp.zeros((B, H), jnp.float32)
    for t in range(T):
        gates = xp_ref[:, t, :] + jnp.dot(h, whh,
                                          preferred_element_type=jnp.float32)
        i_g = jax.nn.sigmoid(gates[:, 0 * H:1 * H])
        f_g = jax.nn.sigmoid(gates[:, 1 * H:2 * H])
        g_g = jnp.tanh(gates[:, 2 * H:3 * H])
        o_g = jax.nn.sigmoid(gates[:, 3 * H:4 * H])
        c = f_g * c + i_g * g_g
        h = o_g * jnp.tanh(c)

    # Dropout is identity in eval mode; final FC: (B, H) @ (H, 8) + b.
    out_ref[...] = (jnp.dot(h, wfc_ref[...],
                            preferred_element_type=jnp.float32)
                    + bfc_ref[...])


def lstm_forward(x, params):
    """x: (B, T, input_size) float32, batch_first like PyTorch. Returns (B, 8)."""
    B, T, I = x.shape

    # No transpose: batch-first layout kept; reshape is a free (contiguous) view.
    x2d = x.reshape(B * T, I)

    # Pre-transpose weights so the kernel does plain row-major matmuls.
    wih = params["w_ih"].T                            # (I, 4H)
    whh = params["w_hh"].T                            # (H, 4H)
    b = (params["b_ih"] + params["b_hh"]).reshape(1, 4 * HIDDEN)
    wfc = params["w_fc"].T                            # (H, 8)
    bfc = params["b_fc"].reshape(1, OUT)

    vmem = lambda: pl.BlockSpec(memory_space=pltpu.MemorySpace.VMEM)

    return pl.pallas_call(
        _lstm_fc_kernel,
        out_shape=jax.ShapeDtypeStruct((B, OUT), jnp.float32),
        # No grid: whole operands (~0.4 MiB total) resident in VMEM.
        in_specs=[vmem(), vmem(), vmem(), vmem(), vmem(), vmem()],
        out_specs=vmem(),
        scratch_shapes=[pltpu.VMEM((B, T, 4 * HIDDEN), jnp.float32)],  # X_proj
    )(x2d, wih, whh, b, wfc, bfc)


def init_params(key, input_size):
    """Deterministic init matching PyTorch shapes (uniform +-1/sqrt(H))."""
    k = 1.0 / np.sqrt(HIDDEN)
    ks = jax.random.split(key, 6)
    u = lambda kk, shape: jax.random.uniform(kk, shape, jnp.float32, -k, k)
    return {
        "w_ih": u(ks[0], (4 * HIDDEN, input_size)),
        "w_hh": u(ks[1], (4 * HIDDEN, HIDDEN)),
        "b_ih": u(ks[2], (4 * HIDDEN,)),
        "b_hh": u(ks[3], (4 * HIDDEN,)),
        "w_fc": u(ks[4], (OUT, HIDDEN)),
        "b_fc": u(ks[5], (OUT,)),
    }


def reference_forward(x, params):
    """Pure-JAX reference (lax.scan) mirroring PyTorch nn.LSTM semantics."""
    B, T, I = x.shape
    wih, whh = params["w_ih"], params["w_hh"]
    b = params["b_ih"] + params["b_hh"]

    def step(carry, x_t):
        h, c = carry
        gates = x_t @ wih.T + h @ whh.T + b
        i_g = jax.nn.sigmoid(gates[:, 0 * HIDDEN:1 * HIDDEN])
        f_g = jax.nn.sigmoid(gates[:, 1 * HIDDEN:2 * HIDDEN])
        g_g = jnp.tanh(gates[:, 2 * HIDDEN:3 * HIDDEN])
        o_g = jax.nn.sigmoid(gates[:, 3 * HIDDEN:4 * HIDDEN])
        c = f_g * c + i_g * g_g
        h = o_g * jnp.tanh(c)
        return (h, c), None

    h0 = jnp.zeros((B, HIDDEN), jnp.float32)
    (h_T, _), _ = jax.lax.scan(step, (h0, h0), jnp.transpose(x, (1, 0, 2)))
    return h_T @ params["w_fc"].T + params["b_fc"]


if __name__ == "__main__":
    B, T, INPUT_SIZE = 2, 8, 32
    key = jax.random.PRNGKey(0)
    kx, kp = jax.random.split(key)
    x = jax.random.normal(kx, (B, T, INPUT_SIZE), jnp.float32)
    params = init_params(kp, INPUT_SIZE)

    out = lstm_forward(x, params)
    out = jax.block_until_ready(out)

    ref = reference_forward(x, params)
    np.testing.assert_allclose(np.asarray(out), np.asarray(ref),
                               rtol=1e-4, atol=1e-5)
    print("KERNEL_OK")
</pallas_src>

<mosaic_0001>
module attributes {stable_mosaic.version = 11 : i64} {
  func.func @_lstm_fc_kernel(%arg0: memref<16x32xf32, #tpu.memory_space<vmem>>, %arg1: memref<32x512xf32, #tpu.memory_space<vmem>>, %arg2: memref<128x512xf32, #tpu.memory_space<vmem>>, %arg3: memref<1x512xf32, #tpu.memory_space<vmem>>, %arg4: memref<128x8xf32, #tpu.memory_space<vmem>>, %arg5: memref<1x8xf32, #tpu.memory_space<vmem>>, %arg6: memref<2x8xf32, #tpu.memory_space<vmem>>, %arg7: memref<2x8x512xf32, #tpu.memory_space<vmem>>) attributes {dimension_semantics = [], scalar_prefetch = 0 : i64, scratch_operands = 1 : i64, tpu.core_type = #tpu.core_type<tc>} {
    %c0 = arith.constant 0 : index
    %c0_0 = arith.constant 0 : index
    %0 = vector.load %arg0[%c0, %c0_0] : memref<16x32xf32, #tpu.memory_space<vmem>>, vector<16x32xf32>
    %c0_1 = arith.constant 0 : index
    %c0_2 = arith.constant 0 : index
    %1 = vector.load %arg1[%c0_1, %c0_2] : memref<32x512xf32, #tpu.memory_space<vmem>>, vector<32x512xf32>
    %cst = arith.constant dense<0.000000e+00> : vector<16x512xf32>
    %2 = tpu.matmul %0, %1, %cst {dimension_numbers = #tpu.dot_dimension_numbers<[1], [0], [0], [1], [0, 0, 1, 1], [], []>} : vector<16x32xf32>, vector<32x512xf32>, vector<16x512xf32> -> vector<16x512xf32>
    %c0_3 = arith.constant 0 : index
    %c0_4 = arith.constant 0 : index
    %3 = vector.load %arg3[%c0_3, %c0_4] : memref<1x512xf32, #tpu.memory_space<vmem>>, vector<1x512xf32>
    %4 = vector.broadcast %3 : vector<1x512xf32> to vector<16x512xf32>
    %5 = arith.addf %2, %4 : vector<16x512xf32>
    %6 = vector.shape_cast %5 : vector<16x512xf32> to vector<2x8x512xf32>
    %c0_5 = arith.constant 0 : index
    %c0_6 = arith.constant 0 : index
    %c0_7 = arith.constant 0 : index
    %7 = vector.load %arg7[%c0_5, %c0_6, %c0_7] : memref<2x8x512xf32, #tpu.memory_space<vmem>>, vector<2x8x512xf32>
    tpu.vector_store %arg7[%c0_5, %c0_6, %c0_7], %6 {strides = array<i32>} : memref<2x8x512xf32, #tpu.memory_space<vmem>>, vector<2x8x512xf32>,
    %c0_8 = arith.constant 0 : index
    %c0_9 = arith.constant 0 : index
    %8 = vector.load %arg2[%c0_8, %c0_9] : memref<128x512xf32, #tpu.memory_space<vmem>>, vector<128x512xf32>
    %cst_10 = arith.constant 0.000000e+00 : f32
    %9 = vector.broadcast %cst_10 : f32 to vector<2x128xf32>
    %cst_11 = arith.constant 0.000000e+00 : f32
    %10 = vector.broadcast %cst_11 : f32 to vector<2x128xf32>
    %c0_12 = arith.constant 0 : index
    %c0_13 = arith.constant 0 : index
    %c0_14 = arith.constant 0 : index
    %11 = vector.load %arg7[%c0_12, %c0_13, %c0_14] : memref<2x8x512xf32, #tpu.memory_space<vmem>>, vector<2x1x512xf32>
    %12 = vector.shape_cast %11 : vector<2x1x512xf32> to vector<2x512xf32>
    %cst_15 = arith.constant dense<0.000000e+00> : vector<2x512xf32>
    %13 = tpu.matmul %9, %8, %cst_15 {dimension_numbers = #tpu.dot_dimension_numbers<[1], [0], [0], [1], [0, 0, 1, 1], [], []>} : vector<2x128xf32>, vector<128x512xf32>, vector<2x512xf32> -> vector<2x512xf32>
    %14 = arith.addf %12, %13 : vector<2x512xf32>
    %15 = vector.extract_strided_slice %14 {offsets = [0, 0], sizes = [2, 128], strides = [1, 1]} : vector<2x512xf32> to vector<2x128xf32>
    %16 = arith.negf %15 : vector<2x128xf32>
    %17 = math.exp %16 : vector<2x128xf32>
    %cst_16 = arith.constant 1.000000e+00 : f32
    %18 = vector.broadcast %cst_16 : f32 to vector<2x128xf32>
    %19 = arith.addf %18, %17 : vector<2x128xf32>
    %20 = arith.divf %18, %19 : vector<2x128xf32>
    %21 = vector.extract_strided_slice %14 {offsets = [0, 128], sizes = [2, 128], strides = [1, 1]} : vector<2x512xf32> to vector<2x128xf32>
    %22 = arith.negf %21 : vector<2x128xf32>
    %23 = math.exp %22 : vector<2x128xf32>
    %cst_17 = arith.constant 1.000000e+00 : f32
    %24 = vector.broadcast %cst_17 : f32 to vector<2x128xf32>
    %25 = arith.addf %24, %23 : vector<2x128xf32>
    %26 = arith.divf %24, %25 : vector<2x128xf32>
    %27 = vector.extract_strided_slice %14 {offsets = [0, 256], sizes = [2, 128], strides = [1, 1]} : vector<2x512xf32> to vector<2x128xf32>
    %28 = math.tanh %27 : vector<2x128xf32>
    %29 = vector.extract_strided_slice %14 {offsets = [0, 384], sizes = [2, 128], strides = [1, 1]} : vector<2x512xf32> to vector<2x128xf32>
    %30 = arith.negf %29 : vector<2x128xf32>
    %31 = math.exp %30 : vector<2x128xf32>
    %cst_18 = arith.constant 1.000000e+00 : f32
    %32 = vector.broadcast %cst_18 : f32 to vector<2x128xf32>
    %33 = arith.addf %32, %31 : vector<2x128xf32>
    %34 = arith.divf %32, %33 : vector<2x128xf32>
    %35 = arith.mulf %26, %10 : vector<2x128xf32>
    %36 = arith.mulf %20, %28 : vector<2x128xf32>
    %37 = arith.addf %35, %36 : vector<2x128xf32>
    %38 = math.tanh %37 : vector<2x128xf32>
    %39 = arith.mulf %34, %38 : vector<2x128xf32>
    %c0_19 = arith.constant 0 : index
    %c1 = arith.constant 1 : index
    %c0_20 = arith.constant 0 : index
    %40 = vector.load %arg7[%c0_19, %c1, %c0_20] : memref<2x8x512xf32, #tpu.memory_space<vmem>>, vector<2x1x512xf32>
    %41 = vector.shape_cast %40 : vector<2x1x512xf32> to vector<2x512xf32>
    %cst_21 = arith.constant dense<0.000000e+00> : vector<2x512xf32>
    %42 = tpu.matmul %39, %8, %cst_21 {dimension_numbers = #tpu.dot_dimension_numbers<[1], [0], [0], [1], [0, 0, 1, 1], [], []>} : vector<2x128xf32>, vector<128x512xf32>, vector<2x512xf32> -> vector<2x512xf32>
    %43 = arith.addf %41, %42 : vector<2x512xf32>
    %44 = vector.extract_strided_slice %43 {offsets = [0, 0], sizes = [2, 128], strides = [1, 1]} : vector<2x512xf32> to vector<2x128xf32>
    %45 = arith.negf %44 : vector<2x128xf32>
    %46 = math.exp %45 : vector<2x128xf32>
    %cst_22 = arith.constant 1.000000e+00 : f32
    %47 = vector.broadcast %cst_22 : f32 to vector<2x128xf32>
    %48 = arith.addf %47, %46 : vector<2x128xf32>
    %49 = arith.divf %47, %48 : vector<2x128xf32>
    %50 = vector.extract_strided_slice %43 {offsets = [0, 128], sizes = [2, 128], strides = [1, 1]} : vector<2x512xf32> to vector<2x128xf32>
    %51 = arith.negf %50 : vector<2x128xf32>
    %52 = math.exp %51 : vector<2x128xf32>
    %cst_23 = arith.constant 1.000000e+00 : f32
    %53 = vector.broadcast %cst_23 : f32 to vector<2x128xf32>
    %54 = arith.addf %53, %52 : vector<2x128xf32>
    %55 = arith.divf %53, %54 : vector<2x128xf32>
    %56 = vector.extract_strided_slice %43 {offsets = [0, 256], sizes = [2, 128], strides = [1, 1]} : vector<2x512xf32> to vector<2x128xf32>
    %57 = math.tanh %56 : vector<2x128xf32>
    %58 = vector.extract_strided_slice %43 {offsets = [0, 384], sizes = [2, 128], strides = [1, 1]} : vector<2x512xf32> to vector<2x128xf32>
    %59 = arith.negf %58 : vector<2x128xf32>
    %60 = math.exp %59 : vector<2x128xf32>
    %cst_24 = arith.constant 1.000000e+00 : f32
    %61 = vector.broadcast %cst_24 : f32 to vector<2x128xf32>
    %62 = arith.addf %61, %60 : vector<2x128xf32>
    %63 = arith.divf %61, %62 : vector<2x128xf32>
    %64 = arith.mulf %55, %37 : vector<2x128xf32>
    %65 = arith.mulf %49, %57 : vector<2x128xf32>
    %66 = arith.addf %64, %65 : vector<2x128xf32>
    %67 = math.tanh %66 : vector<2x128xf32>
    %68 = arith.mulf %63, %67 : vector<2x128xf32>
    %c0_25 = arith.constant 0 : index
    %c2 = arith.constant 2 : index
    %c0_26 = arith.constant 0 : index
    %69 = vector.load %arg7[%c0_25, %c2, %c0_26] : memref<2x8x512xf32, #tpu.memory_space<vmem>>, vector<2x1x512xf32>
    %70 = vector.shape_cast %69 : vector<2x1x512xf32> to vector<2x512xf32>
    %cst_27 = arith.constant dense<0.000000e+00> : vector<2x512xf32>
    %71 = tpu.matmul %68, %8, %cst_27 {dimension_numbers = #tpu.dot_dimension_numbers<[1], [0], [0], [1], [0, 0, 1, 1], [], []>} : vector<2x128xf32>, vector<128x512xf32>, vector<2x512xf32> -> vector<2x512xf32>
    %72 = arith.addf %70, %71 : vector<2x512xf32>
    %73 = vector.extract_strided_slice %72 {offsets = [0, 0], sizes = [2, 128], strides = [1, 1]} : vector<2x512xf32> to vector<2x128xf32>
    %74 = arith.negf %73 : vector<2x128xf32>
    %75 = math.exp %74 : vector<2x128xf32>
    %cst_28 = arith.constant 1.000000e+00 : f32
    %76 = vector.broadcast %cst_28 : f32 to vector<2x128xf32>
    %77 = arith.addf %76, %75 : vector<2x128xf32>
    %78 = arith.divf %76, %77 : vector<2x128xf32>
    %79 = vector.extract_strided_slice %72 {offsets = [0, 128], sizes = [2, 128], strides = [1, 1]} : vector<2x512xf32> to vector<2x128xf32>
    %80 = arith.negf %79 : vector<2x128xf32>
    %81 = math.exp %80 : vector<2x128xf32>
    %cst_29 = arith.constant 1.000000e+00 : f32
    %82 = vector.broadcast %cst_29 : f32 to vector<2x128xf32>
    %83 = arith.addf %82, %81 : vector<2x128xf32>
    %84 = arith.divf %82, %83 : vector<2x128xf32>
    %85 = vector.extract_strided_slice %72 {offsets = [0, 256], sizes = [2, 128], strides = [1, 1]} : vector<2x512xf32> to vector<2x128xf32>
    %86 = math.tanh %85 : vector<2x128xf32>
    %87 = vector.extract_strided_slice %72 {offsets = [0, 384], sizes = [2, 128], strides = [1, 1]} : vector<2x512xf32> to vector<2x128xf32>
    %88 = arith.negf %87 : vector<2x128xf32>
    %89 = math.exp %88 : vector<2x128xf32>
    %cst_30 = arith.constant 1.000000e+00 : f32
    %90 = vector.broadcast %cst_30 : f32 to vector<2x128xf32>
    %91 = arith.addf %90, %89 : vector<2x128xf32>
    %92 = arith.divf %90, %91 : vector<2x128xf32>
    %93 = arith.mulf %84, %66 : vector<2x128xf32>
    %94 = arith.mulf %78, %86 : vector<2x128xf32>
    %95 = arith.addf %93, %94 : vector<2x128xf32>
    %96 = math.tanh %95 : vector<2x128xf32>
    %97 = arith.mulf %92, %96 : vector<2x128xf32>
    %c0_31 = arith.constant 0 : index
    %c3 = arith.constant 3 : index
    %c0_32 = arith.constant 0 : index
    %98 = vector.load %arg7[%c0_31, %c3, %c0_32] : memref<2x8x512xf32, #tpu.memory_space<vmem>>, vector<2x1x512xf32>
    %99 = vector.shape_cast %98 : vector<2x1x512xf32> to vector<2x512xf32>
    %cst_33 = arith.constant dense<0.000000e+00> : vector<2x512xf32>
    %100 = tpu.matmul %97, %8, %cst_33 {dimension_numbers = #tpu.dot_dimension_numbers<[1], [0], [0], [1], [0, 0, 1, 1], [], []>} : vector<2x128xf32>, vector<128x512xf32>, vector<2x512xf32> -> vector<2x512xf32>
    %101 = arith.addf %99, %100 : vector<2x512xf32>
    %102 = vector.extract_strided_slice %101 {offsets = [0, 0], sizes = [2, 128], strides = [1, 1]} : vector<2x512xf32> to vector<2x128xf32>
    %103 = arith.negf %102 : vector<2x128xf32>
    %104 = math.exp %103 : vector<2x128xf32>
    %cst_34 = arith.constant 1.000000e+00 : f32
    %105 = vector.broadcast %cst_34 : f32 to vector<2x128xf32>
    %106 = arith.addf %105, %104 : vector<2x128xf32>
    %107 = arith.divf %105, %106 : vector<2x128xf32>
    %108 = vector.extract_strided_slice %101 {offsets = [0, 128], sizes = [2, 128], strides = [1, 1]} : vector<2x512xf32> to vector<2x128xf32>
    %109 = arith.negf %108 : vector<2x128xf32>
    %110 = math.exp %109 : vector<2x128xf32>
    %cst_35 = arith.constant 1.000000e+00 : f32
    %111 = vector.broadcast %cst_35 : f32 to vector<2x128xf32>
    %112 = arith.addf %111, %110 : vector<2x128xf32>
    %113 = arith.divf %111, %112 : vector<2x128xf32>
    %114 = vector.extract_strided_slice %101 {offsets = [0, 256], sizes = [2, 128], strides = [1, 1]} : vector<2x512xf32> to vector<2x128xf32>
    %115 = math.tanh %114 : vector<2x128xf32>
    %116 = vector.extract_strided_slice %101 {offsets = [0, 384], sizes = [2, 128], strides = [1, 1]} : vector<2x512xf32> to vector<2x128xf32>
    %117 = arith.negf %116 : vector<2x128xf32>
    %118 = math.exp %117 : vector<2x128xf32>
    %cst_36 = arith.constant 1.000000e+00 : f32
    %119 = vector.broadcast %cst_36 : f32 to vector<2x128xf32>
    %120 = arith.addf %119, %118 : vector<2x128xf32>
    %121 = arith.divf %119, %120 : vector<2x128xf32>
    %122 = arith.mulf %113, %95 : vector<2x128xf32>
    %123 = arith.mulf %107, %115 : vector<2x128xf32>
    %124 = arith.addf %122, %123 : vector<2x128xf32>
    %125 = math.tanh %124 : vector<2x128xf32>
    %126 = arith.mulf %121, %125 : vector<2x128xf32>
    %c0_37 = arith.constant 0 : index
    %c4 = arith.constant 4 : index
    %c0_38 = arith.constant 0 : index
    %127 = vector.load %arg7[%c0_37, %c4, %c0_38] : memref<2x8x512xf32, #tpu.memory_space<vmem>>, vector<2x1x512xf32>
    %128 = vector.shape_cast %127 : vector<2x1x512xf32> to vector<2x512xf32>
    %cst_39 = arith.constant dense<0.000000e+00> : vector<2x512xf32>
    %129 = tpu.matmul %126, %8, %cst_39 {dimension_numbers = #tpu.dot_dimension_numbers<[1], [0], [0], [1], [0, 0, 1, 1], [], []>} : vector<2x128xf32>, vector<128x512xf32>, vector<2x512xf32> -> vector<2x512xf32>
    %130 = arith.addf %128, %129 : vector<2x512xf32>
    %131 = vector.extract_strided_slice %130 {offsets = [0, 0], sizes = [2, 128], strides = [1, 1]} : vector<2x512xf32> to vector<2x128xf32>
    %132 = arith.negf %131 : vector<2x128xf32>
    %133 = math.exp %132 : vector<2x128xf32>
    %cst_40 = arith.constant 1.000000e+00 : f32
    %134 = vector.broadcast %cst_40 : f32 to vector<2x128xf32>
    %135 = arith.addf %134, %133 : vector<2x128xf32>
    %136 = arith.divf %134, %135 : vector<2x128xf32>
    %137 = vector.extract_strided_slice %130 {offsets = [0, 128], sizes = [2, 128], strides = [1, 1]} : vector<2x512xf32> to vector<2x128xf32>
    %138 = arith.negf %137 : vector<2x128xf32>
    %139 = math.exp %138 : vector<2x128xf32>
    %cst_41 = arith.constant 1.000000e+00 : f32
    %140 = vector.broadcast %cst_41 : f32 to vector<2x128xf32>
    %141 = arith.addf %140, %139 : vector<2x128xf32>
    %142 = arith.divf %140, %141 : vector<2x128xf32>
    %143 = vector.extract_strided_slice %130 {offsets = [0, 256], sizes = [2, 128], strides = [1, 1]} : vector<2x512xf32> to vector<2x128xf32>
    %144 = math.tanh %143 : vector<2x128xf32>
    %145 = vector.extract_strided_slice %130 {offsets = [0, 384], sizes = [2, 128], strides = [1, 1]} : vector<2x512xf32> to vector<2x128xf32>
    %146 = arith.negf %145 : vector<2x128xf32>
    %147 = math.exp %146 : vector<2x128xf32>
    %cst_42 = arith.constant 1.000000e+00 : f32
    %148 = vector.broadcast %cst_42 : f32 to vector<2x128xf32>
    %149 = arith.addf %148, %147 : vector<2x128xf32>
    %150 = arith.divf %148, %149 : vector<2x128xf32>
    %151 = arith.mulf %142, %124 : vector<2x128xf32>
    %152 = arith.mulf %136, %144 : vector<2x128xf32>
    %153 = arith.addf %151, %152 : vector<2x128xf32>
    %154 = math.tanh %153 : vector<2x128xf32>
    %155 = arith.mulf %150, %154 : vector<2x128xf32>
    %c0_43 = arith.constant 0 : index
    %c5 = arith.constant 5 : index
    %c0_44 = arith.constant 0 : index
    %156 = vector.load %arg7[%c0_43, %c5, %c0_44] : memref<2x8x512xf32, #tpu.memory_space<vmem>>, vector<2x1x512xf32>
    %157 = vector.shape_cast %156 : vector<2x1x512xf32> to vector<2x512xf32>
    %cst_45 = arith.constant dense<0.000000e+00> : vector<2x512xf32>
    %158 = tpu.matmul %155, %8, %cst_45 {dimension_numbers = #tpu.dot_dimension_numbers<[1], [0], [0], [1], [0, 0, 1, 1], [], []>} : vector<2x128xf32>, vector<128x512xf32>, vector<2x512xf32> -> vector<2x512xf32>
    %159 = arith.addf %157, %158 : vector<2x512xf32>
    %160 = vector.extract_strided_slice %159 {offsets = [0, 0], sizes = [2, 128], strides = [1, 1]} : vector<2x512xf32> to vector<2x128xf32>
    %161 = arith.negf %160 : vector<2x128xf32>
    %162 = math.exp %161 : vector<2x128xf32>
    %cst_46 = arith.constant 1.000000e+00 : f32
    %163 = vector.broadcast %cst_46 : f32 to vector<2x128xf32>
    %164 = arith.addf %163, %162 : vector<2x128xf32>
    %165 = arith.divf %163, %164 : vector<2x128xf32>
    %166 = vector.extract_strided_slice %159 {offsets = [0, 128], sizes = [2, 128], strides = [1, 1]} : vector<2x512xf32> to vector<2x128xf32>
    %167 = arith.negf %166 : vector<2x128xf32>
    %168 = math.exp %167 : vector<2x128xf32>
    %cst_47 = arith.constant 1.000000e+00 : f32
    %169 = vector.broadcast %cst_47 : f32 to vector<2x128xf32>
    %170 = arith.addf %169, %168 : vector<2x128xf32>
    %171 = arith.divf %169, %170 : vector<2x128xf32>
    %172 = vector.extract_strided_slice %159 {offsets = [0, 256], sizes = [2, 128], strides = [1, 1]} : vector<2x512xf32> to vector<2x128xf32>
    %173 = math.tanh %172 : vector<2x128xf32>
    %174 = vector.extract_strided_slice %159 {offsets = [0, 384], sizes = [2, 128], strides = [1, 1]} : vector<2x512xf32> to vector<2x128xf32>
    %175 = arith.negf %174 : vector<2x128xf32>
    %176 = math.exp %175 : vector<2x128xf32>
    %cst_48 = arith.constant 1.000000e+00 : f32
    %177 = vector.broadcast %cst_48 : f32 to vector<2x128xf32>
    %178 = arith.addf %177, %176 : vector<2x128xf32>
    %179 = arith.divf %177, %178 : vector<2x128xf32>
    %180 = arith.mulf %171, %153 : vector<2x128xf32>
    %181 = arith.mulf %165, %173 : vector<2x128xf32>
    %182 = arith.addf %180, %181 : vector<2x128xf32>
    %183 = math.tanh %182 : vector<2x128xf32>
    %184 = arith.mulf %179, %183 : vector<2x128xf32>
    %c0_49 = arith.constant 0 : index
    %c6 = arith.constant 6 : index
    %c0_50 = arith.constant 0 : index
    %185 = vector.load %arg7[%c0_49, %c6, %c0_50] : memref<2x8x512xf32, #tpu.memory_space<vmem>>, vector<2x1x512xf32>
    %186 = vector.shape_cast %185 : vector<2x1x512xf32> to vector<2x512xf32>
    %cst_51 = arith.constant dense<0.000000e+00> : vector<2x512xf32>
    %187 = tpu.matmul %184, %8, %cst_51 {dimension_numbers = #tpu.dot_dimension_numbers<[1], [0], [0], [1], [0, 0, 1, 1], [], []>} : vector<2x128xf32>, vector<128x512xf32>, vector<2x512xf32> -> vector<2x512xf32>
    %188 = arith.addf %186, %187 : vector<2x512xf32>
    %189 = vector.extract_strided_slice %188 {offsets = [0, 0], sizes = [2, 128], strides = [1, 1]} : vector<2x512xf32> to vector<2x128xf32>
    %190 = arith.negf %189 : vector<2x128xf32>
    %191 = math.exp %190 : vector<2x128xf32>
    %cst_52 = arith.constant 1.000000e+00 : f32
    %192 = vector.broadcast %cst_52 : f32 to vector<2x128xf32>
    %193 = arith.addf %192, %191 : vector<2x128xf32>
    %194 = arith.divf %192, %193 : vector<2x128xf32>
    %195 = vector.extract_strided_slice %188 {offsets = [0, 128], sizes = [2, 128], strides = [1, 1]} : vector<2x512xf32> to vector<2x128xf32>
    %196 = arith.negf %195 : vector<2x128xf32>
    %197 = math.exp %196 : vector<2x128xf32>
    %cst_53 = arith.constant 1.000000e+00 : f32
    %198 = vector.broadcast %cst_53 : f32 to vector<2x128xf32>
    %199 = arith.addf %198, %197 : vector<2x128xf32>
    %200 = arith.divf %198, %199 : vector<2x128xf32>
    %201 = vector.extract_strided_slice %188 {offsets = [0, 256], sizes = [2, 128], strides = [1, 1]} : vector<2x512xf32> to vector<2x128xf32>
    %202 = math.tanh %201 : vector<2x128xf32>
    %203 = vector.extract_strided_slice %188 {offsets = [0, 384], sizes = [2, 128], strides = [1, 1]} : vector<2x512xf32> to vector<2x128xf32>
    %204 = arith.negf %203 : vector<2x128xf32>
    %205 = math.exp %204 : vector<2x128xf32>
    %cst_54 = arith.constant 1.000000e+00 : f32
    %206 = vector.broadcast %cst_54 : f32 to vector<2x128xf32>
    %207 = arith.addf %206, %205 : vector<2x128xf32>
    %208 = arith.divf %206, %207 : vector<2x128xf32>
    %209 = arith.mulf %200, %182 : vector<2x128xf32>
    %210 = arith.mulf %194, %202 : vector<2x128xf32>
    %211 = arith.addf %209, %210 : vector<2x128xf32>
    %212 = math.tanh %211 : vector<2x128xf32>
    %213 = arith.mulf %208, %212 : vector<2x128xf32>
    %c0_55 = arith.constant 0 : index
    %c7 = arith.constant 7 : index
    %c0_56 = arith.constant 0 : index
    %214 = vector.load %arg7[%c0_55, %c7, %c0_56] : memref<2x8x512xf32, #tpu.memory_space<vmem>>, vector<2x1x512xf32>
    %215 = vector.shape_cast %214 : vector<2x1x512xf32> to vector<2x512xf32>
    %cst_57 = arith.constant dense<0.000000e+00> : vector<2x512xf32>
    %216 = tpu.matmul %213, %8, %cst_57 {dimension_numbers = #tpu.dot_dimension_numbers<[1], [0], [0], [1], [0, 0, 1, 1], [], []>} : vector<2x128xf32>, vector<128x512xf32>, vector<2x512xf32> -> vector<2x512xf32>
    %217 = arith.addf %215, %216 : vector<2x512xf32>
    %218 = vector.extract_strided_slice %217 {offsets = [0, 0], sizes = [2, 128], strides = [1, 1]} : vector<2x512xf32> to vector<2x128xf32>
    %219 = arith.negf %218 : vector<2x128xf32>
    %220 = math.exp %219 : vector<2x128xf32>
    %cst_58 = arith.constant 1.000000e+00 : f32
    %221 = vector.broadcast %cst_58 : f32 to vector<2x128xf32>
    %222 = arith.addf %221, %220 : vector<2x128xf32>
    %223 = arith.divf %221, %222 : vector<2x128xf32>
    %224 = vector.extract_strided_slice %217 {offsets = [0, 128], sizes = [2, 128], strides = [1, 1]} : vector<2x512xf32> to vector<2x128xf32>
    %225 = arith.negf %224 : vector<2x128xf32>
    %226 = math.exp %225 : vector<2x128xf32>
    %cst_59 = arith.constant 1.000000e+00 : f32
    %227 = vector.broadcast %cst_59 : f32 to vector<2x128xf32>
    %228 = arith.addf %227, %226 : vector<2x128xf32>
    %229 = arith.divf %227, %228 : vector<2x128xf32>
    %230 = vector.extract_strided_slice %217 {offsets = [0, 256], sizes = [2, 128], strides = [1, 1]} : vector<2x512xf32> to vector<2x128xf32>
    %231 = math.tanh %230 : vector<2x128xf32>
    %232 = vector.extract_strided_slice %217 {offsets = [0, 384], sizes = [2, 128], strides = [1, 1]} : vector<2x512xf32> to vector<2x128xf32>
    %233 = arith.negf %232 : vector<2x128xf32>
    %234 = math.exp %233 : vector<2x128xf32>
    %cst_60 = arith.constant 1.000000e+00 : f32
    %235 = vector.broadcast %cst_60 : f32 to vector<2x128xf32>
    %236 = arith.addf %235, %234 : vector<2x128xf32>
    %237 = arith.divf %235, %236 : vector<2x128xf32>
    %238 = arith.mulf %229, %211 : vector<2x128xf32>
    %239 = arith.mulf %223, %231 : vector<2x128xf32>
    %240 = arith.addf %238, %239 : vector<2x128xf32>
    %241 = math.tanh %240 : vector<2x128xf32>
    %242 = arith.mulf %237, %241 : vector<2x128xf32>
    %c0_61 = arith.constant 0 : index
    %c0_62 = arith.constant 0 : index
    %243 = vector.load %arg4[%c0_61, %c0_62] : memref<128x8xf32, #tpu.memory_space<vmem>>, vector<128x8xf32>
    %cst_63 = arith.constant dense<0.000000e+00> : vector<2x8xf32>
    %244 = tpu.matmul %242, %243, %cst_63 {dimension_numbers = #tpu.dot_dimension_numbers<[1], [0], [0], [1], [0, 0, 1, 1], [], []>} : vector<2x128xf32>, vector<128x8xf32>, vector<2x8xf32> -> vector<2x8xf32>
    %c0_64 = arith.constant 0 : index
    %c0_65 = arith.constant 0 : index
    %245 = vector.load %arg5[%c0_64, %c0_65] : memref<1x8xf32, #tpu.memory_space<vmem>>, vector<1x8xf32>
    %246 = vector.broadcast %245 : vector<1x8xf32> to vector<2x8xf32>
    %247 = arith.addf %244, %246 : vector<2x8xf32>
    %c0_66 = arith.constant 0 : index
    %c0_67 = arith.constant 0 : index
    %248 = vector.load %arg6[%c0_66, %c0_67] : memref<2x8xf32, #tpu.memory_space<vmem>>, vector<2x8xf32>
    tpu.vector_store %arg6[%c0_66, %c0_67], %247 {strides = array<i32>} : memref<2x8xf32, #tpu.memory_space<vmem>>, vector<2x8xf32>,
    return
  }
}

</mosaic_0001>

<bundles_post_ra>
// kernel: tpu_custom_call.1
= control target key start
LH: loop header
LB: loop body
LE: loop exit
PB: predicated region body
PF: predicated region fallthrough
CT: control target
= control target key end

     0   :  { %11 = vsyncpa [#allocation4], 0  ;;  %s4137_s0 = inlined_call_operand.hbm [shape: f32[16,32], index: 0, kind: input, shape index: {}]   ;;  %s4138_s1 = inlined_call_operand.vmem [shape: f32[32,512], index: 1, kind: input, shape index: {}]   ;;  %s4139_s2 = inlined_call_operand.hbm [shape: f32[128,512], index: 2, kind: input, shape index: {}]   ;;  %s4140_s3 = inlined_call_operand.vmem [shape: f32[1,512], index: 3, kind: input, shape index: {}]   ;;  %s4141_s4 = inlined_call_operand.vmem [shape: f32[128,8], index: 4, kind: input, shape index: {}]   ;;  %s4142_s5 = inlined_call_operand.vmem [shape: f32[1,8], index: 5, kind: input, shape index: {}]   ;;  %s4143_s6 = inlined_call_operand.hbm [shape: f32[2,8], index: 6, kind: output, shape index: {}]  }
   0x1   :  { %12 = vsyncpa [#allocation7], 0 }
   0x2   :  { %13 = vsyncpa [#allocation5], 0  ;;  %s3064_s21 = smov [#allocation3]  }
   0x3   :  { %s19_s22 = sshll.u32 %s3064_s21, 4  ;;  %s20_s22 = int_to_ptr.vmem [resolvable:$true] %s19_s22 }
   0x4   :  { %s3006_s23 = scalar_lea.vmem %s20_s22, 256  ;;  %p3011_p1 = scmp.lt.s32.totalorder %s20_s22, %s20_s22 }
   0x5   :  { %p3007_p0 = scmp.ne.s32.totalorder %s20_s22, %s3006_s23  ;;  %p3012_p2 = scmp.lt.s32.totalorder %s3006_s23, %s3006_s23 }
   0x7   :  { %p3013_p3 = por %p3012_p2, %p3011_p1 }
   0x9   :  { %p3014_p4 = pnand %p3013_p3, %p3007_p0 }
   0xb   :  { %3017 = shalt.err (!%p3014_p4)
}
   0xc   :  { %s3065_s24 = smov 128   ;;  %s3066_s25 = smov 8  }
   0xd   :  { %25 = dma.hbm_to_vmem [thread:$0]  %s4137_s0, 256, %s20_s22, [#allocation4], %s3065_s24, %s3065_s24, %s3066_s25  }
   0xe   :  { %s3067_s28 = smov [#allocation6]  }
   0xf   :  { %s33_s29 = sshll.u32 %s3067_s28, 4  ;;  %s34_s29 = int_to_ptr.vmem [resolvable:$true] %s33_s29 }
  0x10   :  { %s3026_s30 = scalar_lea.vmem %s34_s29, 8192  ;;  %p3031_p6 = scmp.lt.s32.totalorder %s34_s29, %s34_s29 }
  0x11   :  { %p3027_p5 = scmp.ne.s32.totalorder %s34_s29, %s3026_s30  ;;  %p3032_p7 = scmp.lt.s32.totalorder %s3026_s30, %s3026_s30 }
  0x13   :  { %p3033_p8 = por %p3032_p7, %p3031_p6 }
  0x15   :  { %p3034_p9 = pnand %p3033_p8, %p3027_p5 }
  0x17   :  { %3037 = shalt.err (!%p3034_p9)
}
  0x18   :  { %s3068_s7 = smov 512   ;;  %s3069_s8 = smov 32  }
  0x19   :  { %39 = dma.hbm_to_vmem [thread:$0]  %s4139_s2, 8192, %s34_s29, [#allocation7], %s3068_s7, %s3068_s7, %s3069_s8  }
  0x1a   :  { %3058 = dma.done.wait [#allocation4], 256  }
  0x1b   :  { %3059 = vsyncadd [#allocation4], 4294967040 }
  0x1c   :  { %3060 = dma.done.wait [#allocation7], 8192  }
  0x1d   :  { %3061 = vsyncadd [#allocation7], 4294959104  ;;  %v4146_v0 = vmov 0.0   ;;  %v67_v1 = vld [vmem:[%s4138_s1 + $0x68] sm:$0xff]  ;;  %v66_v2 = vld [vmem:[%s4138_s1 + $0x60] sm:$0xff]  ;;  %vm92_vm0 = vcmask 261120  }
  0x1e   :  { %163 = vmatprep.mubr.f32.mxu1 %v4146_v0  ;;  %392 = vmatprep.mubr.f32.mxu0 %v4146_v0  ;;  %v63_v3 = vld [vmem:[%s4138_s1 + $0x48] sm:$0xff]  ;;  %v62_v4 = vld [vmem:[%s4138_s1 + $0x40] sm:$0xff]  ;;  %v3141_v10 = vld [vmem:[#allocation6 + $0x1e8] sm:$0xff]  ;;  %vm3072_vm1 = vmmov 0   ;;  %s3073_s20 = smov [#allocation8]   ;;  %vm2545_vm2 = vcmask 58368  }
  0x1f   :  { %123 = vmatprep.subr.mxu1 %v67_v1  ;;  %v59_v5 = vld [vmem:[%s4138_s1 + $0x28] sm:$0xff]  ;;  %v58_v6 = vld [vmem:[%s4138_s1 + $0x20] sm:$0xff]  ;;  %4239 = vst [vmem:[#allocation12_spill] sm:$0xff] %v3141_v10  ;;  %v69_v11 = vld [vmem:[%s4138_s1 + $0x78] sm:$0xff]  ;;  %328 = vmatprep.subr.mxu0 %v3141_v10  ;;  %s2553_s21 = sshll.u32 %s3073_s20, 4  ;;  %s2554_s21 = int_to_ptr.vmem [resolvable:$true] %s2553_s21 }
  0x20   :  { %124 = vmatpush1.msra.mxu1 %v66_v2  ;;  %v55_v7 = vld [vmem:[%s4138_s1 + $0x8] sm:$0xff]  ;;  %v54_v8 = vld [vmem:[%s4138_s1] sm:$0xff]  ;;  %v3147_v12 = vld [vmem:[#allocation6 + $0x1e0] sm:$0xff]  ;;  %s3038_s22 = scalar_lea.vmem %s2554_s21, 32  ;;  %p3043_p11 = scmp.lt.s32.totalorder %s2554_s21, %s2554_s21 }
  0x21   :  { %125 = vmatprep.subr.mxu1 %v63_v3  ;;  %v52_v9 = vld [vmem:[#allocation3] sm:$0xff]  ;;  %v3149_v13 = vld [vmem:[#allocation6 + $0x1c8] sm:$0xff]  ;;  %v68_v14 = vld [vmem:[%s4138_s1 + $0x70] sm:$0xff]  ;;  %329 = vmatpush1.msra.mxu0 %v3147_v12  ;;  %p3039_p10 = scmp.ne.s32.totalorder %s2554_s21, %s3038_s22  ;;  %p3044_p12 = scmp.lt.s32.totalorder %s3038_s22, %s3038_s22 }
  0x22   :  { %126 = vmatpush1.msra.mxu1 %v62_v4  ;;  %v65_v15 = vld [vmem:[%s4138_s1 + $0x58] sm:$0xff]  ;;  %330 = vmatprep.subr.mxu0 %v3149_v13  ;;  %v3159_v16 = vld [vmem:[#allocation6 + $0x1c0] sm:$0xff]  ;;  %v53_v19 = vld [vmem:[#allocation3 + $0x8] sm:$0xff] }
  0x23   :  { %127 = vmatprep.subr.mxu1 %v59_v5  ;;  %v64_v17 = vld [vmem:[%s4138_s1 + $0x50] sm:$0xff]  ;;  %v3165_v18 = vld [vmem:[#allocation6 + $0x1a8] sm:$0xff]  ;;  %331 = vmatpush1.msra.mxu0 %v3159_v16  ;;  %v3188_v26 = vld [vmem:[#allocation6 + $0x1f8] sm:$0xff]  ;;  %p3045_p13 = por %p3044_p12, %p3043_p11 }
  0x24   :  { %128 = vmatpush1.msra.mxu1 %v58_v6  ;;  %v61_v20 = vld [vmem:[%s4138_s1 + $0x38] sm:$0xff]  ;;  %v60_v21 = vld [vmem:[%s4138_s1 + $0x30] sm:$0xff]  ;;  %332 = vmatprep.subr.mxu0 %v3165_v18  ;;  %4240 = vst [vmem:[#allocation13_spill] sm:$0xff] %v3188_v26  ;;  %v3190_v27 = vld [vmem:[#allocation6 + $0x1f0] sm:$0xff] }
  0x25   :  { %129 = vmatprep.subr.mxu1 %v55_v7  ;;  %v57_v22 = vld [vmem:[%s4138_s1 + $0x18] sm:$0xff]  ;;  %v3179_v23 = vld [vmem:[#allocation6 + $0x1a0] sm:$0xff]  ;;  %v3193_v28 = vld [vmem:[#allocation6 + $0x1d8] sm:$0xff]  ;;  %p3046_p0 = pnand %p3045_p13, %p3039_p10 }
  0x26   :  { %130 = vmatpush1.msra.mxu1 %v54_v8  ;;  %v56_v24 = vld [vmem:[%s4138_s1 + $0x10] sm:$0xff]  ;;  %v3185_v25 = vld [vmem:[#allocation6 + $0x188] sm:$0xff]  ;;  %333 = vmatpush1.msra.mxu0 %v3179_v23  ;;  %v3200_v30 = vld [vmem:[#allocation6 + $0x1d0] sm:$0xff] }
  0x27   :  { %2563 = vmatmul.mubr.msk.f32.vlgmr.msra.gmra.mxu1 %vm92_vm0, %v52_v9  ;;  %200 = vmatprep.subr.mxu1 %v69_v11  ;;  %v3196_v29 = vld [vmem:[#allocation6 + $0x180] sm:$0xff]  ;;  %v3202_v31 = vld [vmem:[#allocation6 + $0x168] sm:$0xff]  ;;  %v3206_v32 = vld [vmem:[#allocation6 + $0x1b8] sm:$0xff] }
  0x28   :  { %201 = vmatpush1.msra.mxu1 %v68_v14  ;;  %169 = vmatprep.mubr.f32.mxu1 %v4146_v0  ;;  %v3210_v33 = vld [vmem:[#allocation6 + $0x1b0] sm:$0xff]  ;;  %v3212_v34 = vld [vmem:[#allocation6 + $0x160] sm:$0xff]  ;;  %v3216_v35 = vld [vmem:[#allocation6 + $0x198] sm:$0xff] }
  0x29   :  { %202 = vmatprep.subr.mxu1 %v65_v15  ;;  %334 = vmatprep.subr.mxu0 %v3185_v25  ;;  %v3218_v36 = vld [vmem:[#allocation6 + $0x148] sm:$0xff]  ;;  %v3222_v37 = vld [vmem:[#allocation6 + $0x190] sm:$0xff]  ;;  %v3224_v38 = vld [vmem:[#allocation6 + $0x140] sm:$0xff] }
  0x2a   :  { %203 = vmatpush1.msra.mxu1 %v64_v17  ;;  %335 = vmatpush1.msra.mxu0 %v3196_v29  ;;  %v3228_v39 = vld [vmem:[#allocation6 + $0x178] sm:$0xff]  ;;  %v3230_v40 = vld [vmem:[#allocation6 + $0x128] sm:$0xff]  ;;  %v3234_v41 = vld [vmem:[#allocation6 + $0x170] sm:$0xff] }
  0x2b   :  { %2564 = vmatmul.mubr.msk.f32.gmra.mxu1 %vm92_vm0, %v53_v19  ;;  %204 = vmatprep.subr.mxu1 %v61_v20  ;;  %v3236_v42 = vld [vmem:[#allocation6 + $0x120] sm:$0xff]  ;;  %v3240_v43 = vld [vmem:[#allocation6 + $0x158] sm:$0xff]  ;;  %v3242_v44 = vld [vmem:[#allocation6 + $0x108] sm:$0xff] }
  0x2c   :  { %205 = vmatpush1.msra.mxu1 %v60_v21  ;;  %240 = vmatprep.mubr.f32.mxu1 %v4146_v0  ;;  %v3246_v45 = vld [vmem:[#allocation6 + $0x150] sm:$0xff]  ;;  %v3248_v46 = vld [vmem:[#allocation6 + $0x100] sm:$0xff]  ;;  %v3252_v47 = vld [vmem:[#allocation6 + $0x138] sm:$0xff] }
  0x2d   :  { %206 = vmatprep.subr.mxu1 %v57_v22  ;;  %336 = vmatprep.subr.mxu0 %v3202_v31  ;;  %v3254_v48 = vld [vmem:[#allocation6 + $0xe8] sm:$0xff]  ;;  %v3258_v49 = vld [vmem:[#allocation6 + $0x130] sm:$0xff]  ;;  %v3260_v50 = vld [vmem:[#allocation6 + $0xe0] sm:$0xff] }
  0x2e   :  { %207 = vmatpush1.msra.mxu1 %v56_v24  ;;  %337 = vmatpush1.msra.mxu0 %v3212_v34  ;;  %v3264_v51 = vld [vmem:[#allocation6 + $0x118] sm:$0xff]  ;;  %v3266_v52 = vld [vmem:[#allocation6 + $0xc8] sm:$0xff]  ;;  %v3270_v53 = vld [vmem:[#allocation6 + $0x110] sm:$0xff] }
  0x2f   :  { %2565 = vmatmul.mubr.msk.f32.vlgmr.msra.gmra.mxu1 %vm92_vm0, %v52_v9  ;;  %399 = vmatprep.subr.mxu1 %v3188_v26  ;;  %v3272_v54 = vld [vmem:[#allocation6 + $0xc0] sm:$0xff]  ;;  %v3276_v55 = vld [vmem:[#allocation6 + $0xf8] sm:$0xff]  ;;  %v3278_v56 = vld [vmem:[#allocation6 + $0xa8] sm:$0xff] }
  0x30   :  { %400 = vmatpush1.msra.mxu1 %v3190_v27  ;;  %246 = vmatprep.mubr.f32.mxu1 %v4146_v0  ;;  %v3282_v57 = vld [vmem:[#allocation6 + $0xf0] sm:$0xff]  ;;  %v3284_v58 = vld [vmem:[#allocation6 + $0xa0] sm:$0xff]  ;;  %v3288_v59 = vld [vmem:[#allocation6 + $0xd8] sm:$0xff] }
  0x31   :  { %401 = vmatprep.subr.mxu1 %v3193_v28  ;;  %338 = vmatprep.subr.mxu0 %v3218_v36  ;;  %v3290_v60 = vld [vmem:[#allocation6 + $0x88] sm:$0xff]  ;;  %v3294_v61 = vld [vmem:[#allocation6 + $0xd0] sm:$0xff]  ;;  %v3296_v62 = vld [vmem:[#allocation6 + $0x80] sm:$0xff] }
  0x32   :  { %402 = vmatpush1.msra.mxu1 %v3200_v30  ;;  %339 = vmatpush1.msra.mxu0 %v3224_v38  ;;  %4241 = vst [vmem:[#allocation14_spill] sm:$0xff] %v3290_v60  ;;  %4242 = vst [vmem:[#allocation15_spill] sm:$0xff] %v3296_v62  ;;  %v3300_v63 = vld [vmem:[#allocation6 + $0xb8] sm:$0xff]  ;;  %v3302_v1 = vld [vmem:[#allocation6 + $0x68] sm:$0xff] }
  0x33   :  { %2566 = vmatmul.mubr.msk.f32.gmra.mxu1 %vm92_vm0, %v53_v19  ;;  %403 = vmatprep.subr.mxu1 %v3206_v32  ;;  %4243 = vst [vmem:[#allocation16_spill] sm:$0xff] %v3302_v1  ;;  %v3306_v2 = vld [vmem:[#allocation6 + $0xb0] sm:$0xff]  ;;  %v3308_v3 = vld [vmem:[#allocation6 + $0x60] sm:$0xff]  ;;  %v3312_v4 = vld [vmem:[#allocation6 + $0x98] sm:$0xff] }
  0x34   :  { %404 = vmatpush1.msra.mxu1 %v3210_v33  ;;  %340 = vmatprep.subr.mxu0 %v3230_v40  ;;  %4244 = vst [vmem:[#allocation17_spill] sm:$0xff] %v3306_v2  ;;  %4245 = vst [vmem:[#allocation18_spill] sm:$0xff] %v3308_v3  ;;  %v3314_v5 = vld [vmem:[#allocation6 + $0x48] sm:$0xff]  ;;  %v3318_v6 = vld [vmem:[#allocation6 + $0x90] sm:$0xff] }
  0x35   :  { %405 = vmatprep.subr.mxu1 %v3216_v35  ;;  %341 = vmatpush1.msra.mxu0 %v3236_v42  ;;  %4246 = vst [vmem:[#allocation19_spill] sm:$0xff] %v3312_v4  ;;  %4247 = vst [vmem:[#allocation20_spill] sm:$0xff] %v3314_v5  ;;  %v3320_v7 = vld [vmem:[#allocation6 + $0x40] sm:$0xff]  ;;  %v3324_v8 = vld [vmem:[#allocation6 + $0x78] sm:$0xff] }
  0x36   :  { %406 = vmatpush1.msra.mxu1 %v3222_v37  ;;  %342 = vmatprep.subr.mxu0 %v3242_v44  ;;  %4248 = vst [vmem:[#allocation21_spill] sm:$0xff] %v3318_v6  ;;  %4249 = vst [vmem:[#allocation22_spill] sm:$0xff] %v3320_v7  ;;  %v3326_v9 = vld [vmem:[#allocation6 + $0x28] sm:$0xff]  ;;  %v3330_v11 = vld [vmem:[#allocation6 + $0x70] sm:$0xff] }
  0x37   :  { %407 = vmatprep.subr.mxu1 %v3228_v39  ;;  %343 = vmatpush1.msra.mxu0 %v3248_v46  ;;  %4250 = vst [vmem:[#allocation23_spill] sm:$0xff] %v3324_v8  ;;  %4251 = vst [vmem:[#allocation24_spill] sm:$0xff] %v3326_v9  ;;  %v3332_v14 = vld [vmem:[#allocation6 + $0x20] sm:$0xff]  ;;  %v3336_v15 = vld [vmem:[#allocation6 + $0x58] sm:$0xff] }
  0x38   :  { %408 = vmatpush1.msra.mxu1 %v3234_v41  ;;  %344 = vmatprep.subr.mxu0 %v3254_v48  ;;  %4252 = vst [vmem:[#allocation25_spill] sm:$0xff] %v3330_v11  ;;  %4253 = vst [vmem:[#allocation26_spill] sm:$0xff] %v3332_v14  ;;  %v3338_v17 = vld [vmem:[#allocation6 + $0x8] sm:$0xff]  ;;  %v3342_v19 = vld [vmem:[#allocation6 + $0x50] sm:$0xff] }
  0x39   :  { %409 = vmatprep.subr.mxu1 %v3240_v43  ;;  %345 = vmatpush1.msra.mxu0 %v3260_v50  ;;  %4254 = vst [vmem:[#allocation27_spill] sm:$0xff] %v3336_v15  ;;  %4255 = vst [vmem:[#allocation28_spill] sm:$0xff] %v3338_v17  ;;  %v3344_v20 = vld [vmem:[#allocation6] sm:$0xff]  ;;  %v3348_v21 = vld [vmem:[#allocation6 + $0x38] sm:$0xff] }
  0x3a   :  { %410 = vmatpush1.msra.mxu1 %v3246_v45  ;;  %346 = vmatprep.subr.mxu0 %v3266_v52  ;;  %4256 = vst [vmem:[#allocation29_spill] sm:$0xff] %v3342_v19  ;;  %4257 = vst [vmem:[#allocation30_spill] sm:$0xff] %v3344_v20  ;;  %v3352_v22 = vld [vmem:[#allocation6 + $0x30] sm:$0xff]  ;;  %v3356_v24 = vld [vmem:[#allocation6 + $0x18] sm:$0xff] }
  0x3b   :  { %411 = vmatprep.subr.mxu1 %v3252_v47  ;;  %347 = vmatpush1.msra.mxu0 %v3272_v54  ;;  %4258 = vst [vmem:[#allocation31_spill] sm:$0xff] %v3348_v21  ;;  %4259 = vst [vmem:[#allocation32_spill] sm:$0xff] %v3352_v22 }
  0x3c   :  { %412 = vmatpush1.msra.mxu1 %v3258_v49  ;;  %348 = vmatprep.subr.mxu0 %v3278_v56  ;;  %4260 = vst [vmem:[#allocation33_spill] sm:$0xff] %v3356_v24 }
  0x3d   :  { %413 = vmatprep.subr.mxu1 %v3264_v51  ;;  %349 = vmatpush1.msra.mxu0 %v3284_v58 }
  0x3e   :  { %414 = vmatpush1.msra.mxu1 %v3270_v53  ;;  %350 = vmatprep.subr.mxu0 %v3290_v60 }
  0x3f   :  { %415 = vmatprep.subr.mxu1 %v3276_v55  ;;  %351 = vmatpush1.msra.mxu0 %v3296_v62 }
  0x40   :  { %416 = vmatpush1.msra.mxu1 %v3282_v57  ;;  %352 = vmatprep.subr.mxu0 %v3302_v1 }
  0x41   :  { %417 = vmatprep.subr.mxu1 %v3288_v59  ;;  %353 = vmatpush1.msra.mxu0 %v3308_v3 }
  0x42   :  { %418 = vmatpush1.msra.mxu1 %v3294_v61  ;;  %354 = vmatprep.subr.mxu0 %v3314_v5 }
  0x43   :  { %419 = vmatprep.subr.mxu1 %v3300_v63  ;;  %355 = vmatpush1.msra.mxu0 %v3320_v7 }
  0x44   :  { %420 = vmatpush1.msra.mxu1 %v3306_v2  ;;  %356 = vmatprep.subr.mxu0 %v3326_v9  ;;  %v3360_v9 = vld [vmem:[#allocation6 + $0x10] sm:$0xff] }
  0x45   :  { %421 = vmatprep.subr.mxu1 %v3312_v4  ;;  %357 = vmatpush1.msra.mxu0 %v3332_v14  ;;  %4261 = vst [vmem:[#allocation34_spill] sm:$0xff] %v3360_v9 }
  0x46   :  { %422 = vmatpush1.msra.mxu1 %v3318_v6  ;;  %358 = vmatprep.subr.mxu0 %v3338_v17 }
  0x47   :  { %423 = vmatprep.subr.mxu1 %v3324_v8  ;;  %359 = vmatpush1.msra.mxu0 %v3344_v20 }
  0x48   :  { %424 = vmatpush1.msra.mxu1 %v3330_v11  ;;  %393 = vmatmul.mubr.f32.vlgmr.msra.gmra.mxu0 %v4146_v0 }
  0x49   :  { %425 = vmatprep.subr.mxu1 %v3336_v15  ;;  %463 = vmatprep.mubr.f32.mxu1 %v4146_v0 }
  0x4a   :  { %426 = vmatpush1.msra.mxu1 %v3342_v19  ;;  %594 = vmatprep.subr.mxu0 %v3141_v10 }
  0x4b   :  { %427 = vmatprep.subr.mxu1 %v3348_v21  ;;  %595 = vmatpush1.msra.mxu0 %v3147_v12 }
  0x4c   :  { %428 = vmatpush1.msra.mxu1 %v3352_v22  ;;  %596 = vmatprep.subr.mxu0 %v3149_v13 }
  0x4d   :  { %429 = vmatprep.subr.mxu1 %v3356_v24  ;;  %597 = vmatpush1.msra.mxu0 %v3159_v16 }
  0x4e   :  { %430 = vmatpush1.msra.mxu1 %v3360_v9  ;;  %598 = vmatprep.subr.mxu0 %v3165_v18 }
  0x4f   :  { %464 = vmatmul.mubr.f32.vlgmr.msra.gmra.mxu1 %v4146_v0  ;;  %665 = vmatprep.subr.mxu1 %v3188_v26  ;;  %v4262_v0 = vld [vmem:[#allocation24_spill] sm:$0xff] }
  0x50   :  { %666 = vmatpush1.msra.mxu1 %v3190_v27  ;;  %599 = vmatpush1.msra.mxu0 %v3179_v23 }
  0x51   :  { %667 = vmatprep.subr.mxu1 %v3193_v28  ;;  %600 = vmatprep.subr.mxu0 %v3185_v25 }
  0x52   :  { %668 = vmatpush1.msra.mxu1 %v3200_v30  ;;  %601 = vmatpush1.msra.mxu0 %v3196_v29 }
  0x53   :  { %669 = vmatprep.subr.mxu1 %v3206_v32  ;;  %602 = vmatprep.subr.mxu0 %v3202_v31 }
  0x54   :  { %670 = vmatpush1.msra.mxu1 %v3210_v33  ;;  %603 = vmatpush1.msra.mxu0 %v3212_v34 }
  0x55   :  { %671 = vmatprep.subr.mxu1 %v3216_v35  ;;  %604 = vmatprep.subr.mxu0 %v3218_v36 }
  0x56   :  { %672 = vmatpush1.msra.mxu1 %v3222_v37  ;;  %605 = vmatpush1.msra.mxu0 %v3224_v38 }
  0x57   :  { %673 = vmatprep.subr.mxu1 %v3228_v39  ;;  %606 = vmatprep.subr.mxu0 %v3230_v40 }
  0x58   :  { %674 = vmatpush1.msra.mxu1 %v3234_v41  ;;  %607 = vmatpush1.msra.mxu0 %v3236_v42 }
  0x59   :  { %675 = vmatprep.subr.mxu1 %v3240_v43  ;;  %608 = vmatprep.subr.mxu0 %v3242_v44 }
  0x5a   :  { %676 = vmatpush1.msra.mxu1 %v3246_v45  ;;  %609 = vmatpush1.msra.mxu0 %v3248_v46 }
  0x5b   :  { %677 = vmatprep.subr.mxu1 %v3252_v47  ;;  %610 = vmatprep.subr.mxu0 %v3254_v48 }
  0x5c   :  { %678 = vmatpush1.msra.mxu1 %v3258_v49  ;;  %611 = vmatpush1.msra.mxu0 %v3260_v50 }
  0x5d   :  { %679 = vmatprep.subr.mxu1 %v3264_v51  ;;  %612 = vmatprep.subr.mxu0 %v3266_v52 }
  0x5e   :  { %680 = vmatpush1.msra.mxu1 %v3270_v53  ;;  %613 = vmatpush1.msra.mxu0 %v3272_v54 }
  0x5f   :  { %681 = vmatprep.subr.mxu1 %v3276_v55  ;;  %614 = vmatprep.subr.mxu0 %v3278_v56 }
  0x60   :  { %682 = vmatpush1.msra.mxu1 %v3282_v57  ;;  %615 = vmatpush1.msra.mxu0 %v3284_v58 }
  0x61   :  { %683 = vmatprep.subr.mxu1 %v3288_v59  ;;  %616 = vmatprep.subr.mxu0 %v3290_v60 }
  0x62   :  { %684 = vmatpush1.msra.mxu1 %v3294_v61  ;;  %617 = vmatpush1.msra.mxu0 %v3296_v62 }
  0x63   :  { %685 = vmatprep.subr.mxu1 %v3300_v63  ;;  %618 = vmatprep.subr.mxu0 %v3302_v1 }
  0x64   :  { %686 = vmatpush1.msra.mxu1 %v3306_v2  ;;  %619 = vmatpush1.msra.mxu0 %v3308_v3 }
  0x65   :  { %687 = vmatprep.subr.mxu1 %v3312_v4  ;;  %620 = vmatprep.subr.mxu0 %v3314_v5  ;;  %v4263_v5 = vmov 0.0  }
  0x66   :  { %688 = vmatpush1.msra.mxu1 %v3318_v6  ;;  %621 = vmatpush1.msra.mxu0 %v3320_v7 }
  0x67   :  { %689 = vmatprep.subr.mxu1 %v3324_v8  ;;  %622 = vmatprep.subr.mxu0 %v4262_v0 }
  0x68   :  { %690 = vmatpush1.msra.mxu1 %v3330_v11  ;;  %623 = vmatpush1.msra.mxu0 %v3332_v14 }
  0x69   :  { %691 = vmatprep.subr.mxu1 %v3336_v15  ;;  %624 = vmatprep.subr.mxu0 %v3338_v17  ;;  %v70_v17 = vld [vmem:[%s4140_s3] sm:$0xf] }
  0x6a   :  { %692 = vmatpush1.msra.mxu1 %v3342_v19  ;;  %625 = vmatpush1.msra.mxu0 %v3344_v20 }
  0x6b   :  { %693 = vmatprep.subr.mxu1 %v3348_v21  ;;  %658 = vmatprep.mubr.f32.mxu0 %v4263_v5  ;;  %v72_v21 = vlaneseq }
  0x6c   :  { %694 = vmatpush1.msra.mxu1 %v3352_v22  ;;  %729 = vmatprep.mubr.f32.mxu1 %v4263_v5 }
  0x6d   :  { %695 = vmatprep.subr.mxu1 %v3356_v24  ;;  %860 = vmatprep.subr.mxu0 %v3141_v10  ;;  %v73_v14 = vshrl.u32 %v72_v21, 7 }
  0x6e   :  { %696 = vmatpush1.msra.mxu1 %v3360_v9 }
  0x6f   :  { %931 = vmatprep.subr.mxu1 %v3188_v26  ;;  %v74_v0 = vsub.s32 0, %v73_v14  ;;  %v78_v24 = vsub.s32 1, %v73_v14  ;;  %v82_v15 = vsub.s32 2, %v73_v14  ;;  %v86_v11 = vsub.s32 3, %v73_v14 }
  0x71   :  { %v75_v22 = vrot.slane %v70_v17, %v74_v0  ;;  %v79_v20 = vrot.slane %v70_v17, %v78_v24  ;;  %v83_v3 = vrot.slane %v70_v17, %v82_v15  ;;  %v87_v1 = vrot.slane %v70_v17, %v86_v11 }
  0xe7   :  { %v165_v19 = vpop.f32.mrf.mxu1 }
  0xe8   :  { %v166_v7 = vadd.f32 %v165_v19, %v75_v22 }
  0xe9   :  { %v167_v9 = vpop.f32.mrf.mxu1 }
  0xea   :  { %253 = vst [vmem:[#allocation2] sm:$0xff] %v166_v7  ;;  %v168_v5 = vadd.f32 %v167_v9, %v79_v20 }
  0xeb   :  { %v171_v10 = vpop.f32.mrf.mxu1 }
  0xec   :  { %254 = vst [vmem:[#allocation2 + $0x8] sm:$0xff] %v168_v5  ;;  %v172_v26 = vadd.f32 %v171_v10, %v75_v22  ;;  %v3071_v5 = vmov 1966171168  }
  0xed   :  { %v173_v21 = vpop.f32.mrf.mxu1  ;;  %v477_v10 = vunpack.c.l.s4 %v3071_v5 }
  0xee   :  { %257 = vst [vmem:[#allocation2 + $0x20] sm:$0xff] %v172_v26  ;;  %v174_v8 = vadd.f32 %v173_v21, %v79_v20 }
  0xef   :  { %v242_v6 = vpop.f32.mrf.mxu1  ;;  %v478_v22 = vunpack.c.0.s8 %v477_v10 }
  0xf0   :  { %258 = vst [vmem:[#allocation2 + $0x28] sm:$0xff] %v174_v8  ;;  %v243_v62 = vadd.f32 %v242_v6, %v83_v3 }
  0xf1   :  { %v244_v0 = vpop.f32.mrf.mxu1  ;;  %v3438_v11 = vsub.s32 %v478_v22, %v73_v14 }
  0xf2   :  { %255 = vst [vmem:[#allocation2 + $0x10] sm:$0xff] %v243_v62  ;;  %v245_v24 = vadd.f32 %v244_v0, %v87_v1 }
  0xf3   :  { %v248_v19 = vpop.f32.mrf.mxu1 }
  0xf4   :  { %256 = vst [vmem:[#allocation2 + $0x18] sm:$0xff] %v245_v24  ;;  %v249_v4 = vadd.f32 %v248_v19, %v83_v3 }
  0xf5   :  { %v250_v7 = vpop.f32.mrf.mxu1 }
  0xf6   :  { %259 = vst [vmem:[#allocation2 + $0x30] sm:$0xff] %v249_v4  ;;  %v251_v9 = vadd.f32 %v250_v7, %v87_v1 }
  0xf8   :  { %260 = vst [vmem:[#allocation2 + $0x38] sm:$0xff] %v251_v9 }
  0xfb   :  { %v325_v24 = vld [vmem:[#allocation2] ss:$8 sm:$0xf] }
  0xff   :  { %v327_v19 = vld [vmem:[#allocation2 + $0x20] ss:$8 sm:$0xf] }
 0x108   :  { %v394_v15 = vpop.f32.mrf.mxu0 }
 0x10a   :  { %v396_v26 = vpop.f32.mrf.mxu0 }
 0x10b   :  { %v474_v8 = vcombine.low %v394_v15, %v396_v26 }
 0x10d   :  { %v482_v62 = vrot.slane %v474_v8, %v3438_v11 }
 0x10f   :  { %v465_v20 = vpop.f32.mrf.mxu1 }
 0x111   :  { %v467_v6 = vpop.f32.mrf.mxu1 }
 0x112   :  { %v475_v17 = vcombine.low %v465_v20, %v467_v6 }
 0x114   :  { %v489_v21 = vrot.slane %v475_v17, %v3438_v11 }
 0x116   :  { %v490_v3 = vcombine.low %v482_v62, %v489_v21  ;;  %v491_v0 = vcombine.high %v482_v62, %v489_v21 }
 0x118   :  { %v498_v1 = vrot.slane %v490_v3, %v3438_v11  ;;  %v505_v4 = vrot.slane %v491_v0, %v3438_v11 }
 0x11a   :  { %v508_v7 = vadd.f32 %v498_v1, %v325_v24  ;;  %v509_v9 = vadd.f32 %v505_v4, %v327_v19 }
 0x11c   :  { %v2567_v5 = vmul.f32 -1.442695, %v508_v7  ;;  %v2568_v14 = vmul.f32 -1.442695, %v509_v9  ;;  %v524_v10 = vrot.slane %v508_v7, 1  ;;  %v525_v15 = vrot.slane %v509_v9, 1 }
 0x11d   :  { %v546_v20 = vrot.slane %v508_v7, 3  ;;  %v547_v8 = vrot.slane %v509_v9, 3  ;;  %v540_v6 = vrot.slane %v508_v7, 2  ;;  %v541_v17 = vrot.slane %v509_v9, 2 }
 0x11e   :  { %2678 = vpow2.f32 %v2567_v5  ;;  %v2569_v22 = vmul.f32 -1.442695, %v524_v10  ;;  %v2570_v26 = vmul.f32 -1.442695, %v525_v15 }
 0x11f   :  { %2680 = vpow2.f32 %v2568_v14  ;;  %v2571_v62 = vmul.f32 -1.442695, %v546_v20  ;;  %v2572_v21 = vmul.f32 -1.442695, %v547_v8 }
 0x120   :  { %2682 = vpow2.f32 %v2569_v22 }
 0x121   :  { %2684 = vpow2.f32 %v2570_v26 }
 0x122   :  { %2686 = vtanh.f32 %v540_v6 }
 0x123   :  { %2688 = vtanh.f32 %v541_v17 }
 0x124   :  { %2690 = vpow2.f32 %v2571_v62 }
 0x125   :  { %2692 = vpow2.f32 %v2572_v21 }
 0x12b   :  { %v2679_v3 = vpop.eup %2678 }
 0x12c   :  { %v2681_v0 = vpop.eup %2680  ;;  %v516_v1 = vadd.f32 1.0, %v2679_v3 }
 0x12d   :  { %v2683_v4 = vpop.eup %2682  ;;  %v517_v24 = vadd.f32 1.0, %v2681_v0 }
 0x12e   :  { %v2685_v19 = vpop.eup %2684  ;;  %2694 = vrcp.f32 %v516_v1  ;;  %v534_v5 = vadd.f32 1.0, %v2683_v4 }
 0x12f   :  { %2696 = vrcp.f32 %v517_v24  ;;  %v535_v14 = vadd.f32 1.0, %v2685_v19  ;;  %v2687_v7 = vpop.eup %2686 }
 0x130   :  { %2698 = vrcp.f32 %v534_v5  ;;  %v2689_v9 = vpop.eup %2688 }
 0x131   :  { %2700 = vrcp.f32 %v535_v14  ;;  %v2691_v10 = vpop.eup %2690 }
 0x132   :  { %v2693_v15 = vpop.eup %2692  ;;  %v556_v20 = vadd.f32 1.0, %v2691_v10 }
 0x133   :  { %v557_v6 = vadd.f32 1.0, %v2693_v15 }
 0x134   :  { %2702 = vrcp.f32 %v556_v20  ;;  %v4266_v20 = vld [vmem:[#allocation21_spill] sm:$0xff] }
 0x135   :  { %2704 = vrcp.f32 %v557_v6  ;;  %v4267_v6 = vld [vmem:[#allocation16_spill] sm:$0xff] }
 0x13b   :  { %v2695_v22 = vpop.eup %2694 }
 0x13c   :  { %v2697_v26 = vpop.eup %2696  ;;  %v564_v3 = vmul.f32 %v2695_v22, %v2687_v7  ;;  %v4264_v22 = vld [vmem:[#allocation19_spill] sm:$0xff] }
 0x13d   :  { %v2699_v8 = vpop.eup %2698  ;;  %v565_v0 = vmul.f32 %v2697_v26, %v2689_v9  ;;  %v4265_v26 = vld [vmem:[#allocation15_spill] sm:$0xff] }
 0x13e   :  { %v2701_v17 = vpop.eup %2700  ;;  %v562_v62 = vmul.f32 0.0, %v2699_v8 }
 0x13f   :  { %v563_v21 = vmul.f32 0.0, %v2701_v17  ;;  %v4268_v17 = vld [vmem:[#allocation23_spill] sm:$0xff] }
 0x140   :  { %v3444_v1 = vadd.f32 %v564_v3, %v562_v62  ;;  %v4269_v62 = vld [vmem:[#allocation18_spill] sm:$0xff]  ;;  %v4270_v3 = vld [vmem:[#allocation25_spill] sm:$0xff] }
 0x141   :  { %v3446_v4 = vadd.f32 %v565_v0, %v563_v21  ;;  %v2703_v24 = vpop.eup %2702  ;;  %v4271_v21 = vld [vmem:[#allocation20_spill] sm:$0xff]  ;;  %v4272_v0 = vld [vmem:[#allocation27_spill] sm:$0xff] }
 0x142   :  { %2706 = vtanh.f32 %v3444_v1  ;;  %v2705_v19 = vpop.eup %2704 }
 0x143   :  { %2708 = vtanh.f32 %v3446_v4 }
 0x14f   :  { %v2707_v5 = vpop.eup %2706 }
 0x150   :  { %v2709_v14 = vpop.eup %2708  ;;  %v570_v10 = vmul.f32 %v2707_v5, %v2703_v24  ;;  %v4273_v24 = vld [vmem:[#allocation22_spill] sm:$0xff]  ;;  %v4275_v5 = vld [vmem:[#allocation24_spill] sm:$0xff] }
 0x151   :  { %v571_v15 = vmul.f32 %v2709_v14, %v2705_v19  ;;  %v4274_v19 = vld [vmem:[#allocation29_spill] sm:$0xff]  ;;  %v4276_v14 = vld [vmem:[#allocation31_spill] sm:$0xff] }
 0x153   :  { %v578_v8 = vcombine.low %v570_v10, %v571_v15  ;;  %v4277_v10 = vld [vmem:[#allocation26_spill] sm:$0xff]  ;;  %v4278_v15 = vld [vmem:[#allocation32_spill] sm:$0xff] }
 0x155   :  { %v585_v7 = vrot.slane %v578_v8, %v3438_v11  ;;  %v4279_v8 = vld [vmem:[#allocation28_spill] sm:$0xff] }
 0x157   :  { %v592_v9 = vrot.slane %v585_v7, %v3438_v11  ;;  %v4280_v7 = vld [vmem:[#allocation33_spill] sm:$0xff] }
 0x159   :  { %659 = vmatmul.mubr.f32.vlgmr.msra.gmra.mxu0 %v592_v9  ;;  %730 = vmatmul.mubr.f32.vlgmr.msra.gmra.mxu1 %v592_v9  ;;  %v4281_v9 = vld [vmem:[#allocation30_spill] sm:$0xff] }
 0x15a   :  { %861 = vmatpush1.msra.mxu0 %v3147_v12  ;;  %932 = vmatpush1.msra.mxu1 %v3190_v27 }
 0x15b   :  { %862 = vmatprep.subr.mxu0 %v3149_v13  ;;  %933 = vmatprep.subr.mxu1 %v3193_v28 }
 0x15c   :  { %863 = vmatpush1.msra.mxu0 %v3159_v16  ;;  %934 = vmatpush1.msra.mxu1 %v3200_v30 }
 0x15d   :  { %864 = vmatprep.subr.mxu0 %v3165_v18  ;;  %935 = vmatprep.subr.mxu1 %v3206_v32 }
 0x15e   :  { %865 = vmatpush1.msra.mxu0 %v3179_v23  ;;  %936 = vmatpush1.msra.mxu1 %v3210_v33 }
 0x15f   :  { %866 = vmatprep.subr.mxu0 %v3185_v25  ;;  %937 = vmatprep.subr.mxu1 %v3216_v35 }
 0x160   :  { %867 = vmatpush1.msra.mxu0 %v3196_v29  ;;  %938 = vmatpush1.msra.mxu1 %v3222_v37 }
 0x161   :  { %868 = vmatprep.subr.mxu0 %v3202_v31  ;;  %939 = vmatprep.subr.mxu1 %v3228_v39 }
 0x162   :  { %869 = vmatpush1.msra.mxu0 %v3212_v34  ;;  %940 = vmatpush1.msra.mxu1 %v3234_v41 }
 0x163   :  { %870 = vmatprep.subr.mxu0 %v3218_v36  ;;  %941 = vmatprep.subr.mxu1 %v3240_v43 }
 0x164   :  { %871 = vmatpush1.msra.mxu0 %v3224_v38  ;;  %942 = vmatpush1.msra.mxu1 %v3246_v45 }
 0x165   :  { %872 = vmatprep.subr.mxu0 %v3230_v40  ;;  %943 = vmatprep.subr.mxu1 %v3252_v47 }
 0x166   :  { %873 = vmatpush1.msra.mxu0 %v3236_v42  ;;  %944 = vmatpush1.msra.mxu1 %v3258_v49 }
 0x167   :  { %874 = vmatprep.subr.mxu0 %v3242_v44  ;;  %945 = vmatprep.subr.mxu1 %v3264_v51 }
 0x168   :  { %875 = vmatpush1.msra.mxu0 %v3248_v46  ;;  %946 = vmatpush1.msra.mxu1 %v3270_v53 }
 0x169   :  { %876 = vmatprep.subr.mxu0 %v3254_v48  ;;  %947 = vmatprep.subr.mxu1 %v3276_v55 }
 0x16a   :  { %877 = vmatpush1.msra.mxu0 %v3260_v50  ;;  %948 = vmatpush1.msra.mxu1 %v3282_v57 }
 0x16b   :  { %878 = vmatprep.subr.mxu0 %v3266_v52  ;;  %949 = vmatprep.subr.mxu1 %v3288_v59 }
 0x16c   :  { %879 = vmatpush1.msra.mxu0 %v3272_v54  ;;  %950 = vmatpush1.msra.mxu1 %v3294_v61 }
 0x16d   :  { %880 = vmatprep.subr.mxu0 %v3278_v56  ;;  %951 = vmatprep.subr.mxu1 %v3300_v63 }
 0x16e   :  { %881 = vmatpush1.msra.mxu0 %v3284_v58  ;;  %952 = vmatpush1.msra.mxu1 %v3306_v2 }
 0x16f   :  { %882 = vmatprep.subr.mxu0 %v3290_v60  ;;  %953 = vmatprep.subr.mxu1 %v4264_v22 }
 0x170   :  { %883 = vmatpush1.msra.mxu0 %v4265_v26  ;;  %954 = vmatpush1.msra.mxu1 %v4266_v20 }
 0x171   :  { %884 = vmatprep.subr.mxu0 %v4267_v6  ;;  %955 = vmatprep.subr.mxu1 %v4268_v17  ;;  %v573_v6 = vld [vmem:[#allocation2 + $0x1] ss:$8 sm:$0xf] }
 0x172   :  { %885 = vmatpush1.msra.mxu0 %v4269_v62  ;;  %956 = vmatpush1.msra.mxu1 %v4270_v3 }
 0x173   :  { %886 = vmatprep.subr.mxu0 %v4271_v21  ;;  %957 = vmatprep.subr.mxu1 %v4272_v0  ;;  %v4282_v21 = vmov 0.0   ;;  %v4283_v0 = vld [vmem:[#allocation34_spill] sm:$0xff] }
 0x174   :  { %887 = vmatpush1.msra.mxu0 %v4273_v24  ;;  %958 = vmatpush1.msra.mxu1 %v4274_v19  ;;  %v4284_v19 = vld [vmem:[#allocation12_spill] sm:$0xff] }
 0x175   :  { %888 = vmatprep.subr.mxu0 %v4275_v5  ;;  %959 = vmatprep.subr.mxu1 %v4276_v14  ;;  %v4285_v5 = vld [vmem:[#allocation13_spill] sm:$0xff] }
 0x176   :  { %889 = vmatpush1.msra.mxu0 %v4277_v10  ;;  %960 = vmatpush1.msra.mxu1 %v4278_v15 }
 0x177   :  { %890 = vmatprep.subr.mxu0 %v4279_v8  ;;  %961 = vmatprep.subr.mxu1 %v4280_v7 }
 0x178   :  { %891 = vmatpush1.msra.mxu0 %v4281_v9  ;;  %924 = vmatprep.mubr.f32.mxu0 %v4282_v21 }
 0x179   :  { %962 = vmatpush1.msra.mxu1 %v4283_v0  ;;  %995 = vmatprep.mubr.f32.mxu1 %v4282_v21 }
 0x17a   :  { %1126 = vmatprep.subr.mxu0 %v4284_v19  ;;  %1197 = vmatprep.subr.mxu1 %v4285_v5  ;;  %v575_v19 = vld [vmem:[#allocation2 + $0x21] ss:$8 sm:$0xf] }
 0x219   :  { %v660_v14 = vpop.f32.mrf.mxu0  ;;  %v731_v10 = vpop.f32.mrf.mxu1 }
 0x21b   :  { %v662_v24 = vpop.f32.mrf.mxu0  ;;  %v733_v15 = vpop.f32.mrf.mxu1 }
 0x21c   :  { %v740_v3 = vcombine.low %v660_v14, %v662_v24  ;;  %v741_v8 = vcombine.low %v731_v10, %v733_v15 }
 0x21e   :  { %v748_v7 = vrot.slane %v740_v3, %v3438_v11  ;;  %v755_v9 = vrot.slane %v741_v8, %v3438_v11 }
 0x220   :  { %v756_v62 = vcombine.low %v748_v7, %v755_v9  ;;  %v757_v17 = vcombine.high %v748_v7, %v755_v9 }
 0x222   :  { %v764_v0 = vrot.slane %v756_v62, %v3438_v11  ;;  %v771_v21 = vrot.slane %v757_v17, %v3438_v11 }
 0x224   :  { %v774_v20 = vadd.f32 %v764_v0, %v573_v6  ;;  %v775_v5 = vadd.f32 %v771_v21, %v575_v19 }
 0x226   :  { %v2573_v26 = vmul.f32 -1.442695, %v774_v20  ;;  %v2574_v22 = vmul.f32 -1.442695, %v775_v5  ;;  %v790_v60 = vrot.slane %v774_v20, 1  ;;  %v791_v2 = vrot.slane %v775_v5, 1 }
 0x227   :  { %v812_v3 = vrot.slane %v774_v20, 3  ;;  %v813_v10 = vrot.slane %v775_v5, 3  ;;  %v806_v15 = vrot.slane %v774_v20, 2  ;;  %v807_v62 = vrot.slane %v775_v5, 2 }
 0x228   :  { %2710 = vpow2.f32 %v2573_v26  ;;  %v2575_v24 = vmul.f32 -1.442695, %v790_v60  ;;  %v2576_v14 = vmul.f32 -1.442695, %v791_v2 }
 0x229   :  { %2712 = vpow2.f32 %v2574_v22  ;;  %v2577_v8 = vmul.f32 -1.442695, %v812_v3  ;;  %v2578_v17 = vmul.f32 -1.442695, %v813_v10 }
 0x22a   :  { %2714 = vpow2.f32 %v2575_v24 }
 0x22b   :  { %2716 = vpow2.f32 %v2576_v14 }
 0x22c   :  { %2718 = vtanh.f32 %v806_v15 }
 0x22d   :  { %2720 = vtanh.f32 %v807_v62 }
 0x22e   :  { %2722 = vpow2.f32 %v2577_v8 }
 0x22f   :  { %2724 = vpow2.f32 %v2578_v17 }
 0x235   :  { %v2711_v7 = vpop.eup %2710 }
 0x236   :  { %v2713_v6 = vpop.eup %2712  ;;  %v782_v21 = vadd.f32 1.0, %v2711_v7 }
 0x237   :  { %v2715_v0 = vpop.eup %2714  ;;  %v783_v9 = vadd.f32 1.0, %v2713_v6 }
 0x238   :  { %v2717_v60 = vpop.eup %2716  ;;  %2726 = vrcp.f32 %v782_v21  ;;  %v800_v2 = vadd.f32 1.0, %v2715_v0 }
 0x239   :  { %2728 = vrcp.f32 %v783_v9  ;;  %v801_v22 = vadd.f32 1.0, %v2717_v60  ;;  %v2719_v26 = vpop.eup %2718 }
 0x23a   :  { %2730 = vrcp.f32 %v800_v2  ;;  %v2721_v20 = vpop.eup %2720 }
 0x23b   :  { %2732 = vrcp.f32 %v801_v22  ;;  %v2723_v19 = vpop.eup %2722 }
 0x23c   :  { %v2725_v5 = vpop.eup %2724  ;;  %v822_v3 = vadd.f32 1.0, %v2723_v19 }
 0x23d   :  { %v823_v15 = vadd.f32 1.0, %v2725_v5 }
 0x23e   :  { %2734 = vrcp.f32 %v822_v3 }
 0x23f   :  { %2736 = vrcp.f32 %v823_v15 }
 0x245   :  { %v2727_v24 = vpop.eup %2726 }
 0x246   :  { %v2729_v14 = vpop.eup %2728  ;;  %v830_v8 = vmul.f32 %v2727_v24, %v2719_v26 }
 0x247   :  { %v2731_v10 = vpop.eup %2730  ;;  %v831_v7 = vmul.f32 %v2729_v14, %v2721_v20 }
 0x248   :  { %v2733_v62 = vpop.eup %2732  ;;  %v828_v17 = vmul.f32 %v2731_v10, %v3444_v1 }
 0x249   :  { %v829_v6 = vmul.f32 %v2733_v62, %v3446_v4 }
 0x24a   :  { %v3524_v21 = vadd.f32 %v830_v8, %v828_v17 }
 0x24b   :  { %v3526_v0 = vadd.f32 %v831_v7, %v829_v6  ;;  %v2735_v9 = vpop.eup %2734 }
 0x24c   :  { %2738 = vtanh.f32 %v3524_v21  ;;  %v2737_v60 = vpop.eup %2736 }
 0x24d   :  { %2740 = vtanh.f32 %v3526_v0 }
 0x259   :  { %v2739_v2 = vpop.eup %2738 }
 0x25a   :  { %v2741_v22 = vpop.eup %2740  ;;  %v836_v26 = vmul.f32 %v2739_v2, %v2735_v9 }
 0x25b   :  { %v837_v19 = vmul.f32 %v2741_v22, %v2737_v60 }
 0x25d   :  { %v844_v1 = vcombine.low %v836_v26, %v837_v19 }
 0x25f   :  { %v851_v20 = vrot.slane %v844_v1, %v3438_v11 }
 0x261   :  { %v858_v4 = vrot.slane %v851_v20, %v3438_v11 }
 0x263   :  { %925 = vmatmul.mubr.f32.vlgmr.msra.gmra.mxu0 %v858_v4  ;;  %996 = vmatmul.mubr.f32.vlgmr.msra.gmra.mxu1 %v858_v4 }
 0x264   :  { %1127 = vmatpush1.msra.mxu0 %v3147_v12  ;;  %1198 = vmatpush1.msra.mxu1 %v3190_v27  ;;  %v4286_v12 = vld [vmem:[#allocation17_spill] sm:$0xff]  ;;  %v4292_v27 = vld [vmem:[#allocation23_spill] sm:$0xff] }
 0x265   :  { %1128 = vmatprep.subr.mxu0 %v3149_v13  ;;  %1199 = vmatprep.subr.mxu1 %v3193_v28  ;;  %v4287_v13 = vld [vmem:[#allocation14_spill] sm:$0xff] }
 0x266   :  { %1129 = vmatpush1.msra.mxu0 %v3159_v16  ;;  %1200 = vmatpush1.msra.mxu1 %v3200_v30  ;;  %v4288_v16 = vld [vmem:[#allocation19_spill] sm:$0xff]  ;;  %v4293_v28 = vld [vmem:[#allocation18_spill] sm:$0xff]  ;;  %v4295_v30 = vld [vmem:[#allocation20_spill] sm:$0xff] }
 0x267   :  { %1130 = vmatprep.subr.mxu0 %v3165_v18  ;;  %1201 = vmatprep.subr.mxu1 %v3206_v32  ;;  %v4289_v18 = vld [vmem:[#allocation15_spill] sm:$0xff]  ;;  %v4297_v32 = vld [vmem:[#allocation22_spill] sm:$0xff] }
 0x268   :  { %1131 = vmatpush1.msra.mxu0 %v3179_v23  ;;  %1202 = vmatpush1.msra.mxu1 %v3210_v33  ;;  %v4290_v23 = vld [vmem:[#allocation21_spill] sm:$0xff] }
 0x269   :  { %1132 = vmatprep.subr.mxu0 %v3185_v25  ;;  %1203 = vmatprep.subr.mxu1 %v3216_v35  ;;  %v4291_v25 = vld [vmem:[#allocation16_spill] sm:$0xff]  ;;  %v4298_v33 = vld [vmem:[#allocation29_spill] sm:$0xff]  ;;  %v4300_v35 = vld [vmem:[#allocation31_spill] sm:$0xff] }
 0x26a   :  { %1133 = vmatpush1.msra.mxu0 %v3196_v29  ;;  %1204 = vmatpush1.msra.mxu1 %v3222_v37  ;;  %v4294_v29 = vld [vmem:[#allocation25_spill] sm:$0xff]  ;;  %v4302_v37 = vld [vmem:[#allocation32_spill] sm:$0xff] }
 0x26b   :  { %1134 = vmatprep.subr.mxu0 %v3202_v31  ;;  %1205 = vmatprep.subr.mxu1 %v3228_v39  ;;  %v4296_v31 = vld [vmem:[#allocation27_spill] sm:$0xff]  ;;  %v4304_v39 = vld [vmem:[#allocation33_spill] sm:$0xff] }
 0x26c   :  { %1135 = vmatpush1.msra.mxu0 %v3212_v34  ;;  %1206 = vmatpush1.msra.mxu1 %v3234_v41  ;;  %v4299_v34 = vld [vmem:[#allocation24_spill] sm:$0xff]  ;;  %v4306_v41 = vmov 0.0  }
 0x26d   :  { %1136 = vmatprep.subr.mxu0 %v3218_v36  ;;  %1207 = vmatprep.subr.mxu1 %v3240_v43  ;;  %v4301_v36 = vld [vmem:[#allocation26_spill] sm:$0xff]  ;;  %v3596_v43 = vld [vmem:[#allocation6 + $0x1e8] sm:$0xff] }
 0x26e   :  { %1137 = vmatpush1.msra.mxu0 %v3224_v38  ;;  %1208 = vmatpush1.msra.mxu1 %v3246_v45  ;;  %v4303_v38 = vld [vmem:[#allocation28_spill] sm:$0xff]  ;;  %4308 = vst [vmem:[#allocation12_spill] sm:$0xff] %v3596_v43 }
 0x26f   :  { %1138 = vmatprep.subr.mxu0 %v3230_v40  ;;  %1209 = vmatprep.subr.mxu1 %v3252_v47  ;;  %v4305_v40 = vld [vmem:[#allocation30_spill] sm:$0xff] }
 0x270   :  { %1139 = vmatpush1.msra.mxu0 %v3236_v42  ;;  %1210 = vmatpush1.msra.mxu1 %v3258_v49  ;;  %v4307_v42 = vld [vmem:[#allocation34_spill] sm:$0xff] }
 0x271   :  { %1140 = vmatprep.subr.mxu0 %v3242_v44  ;;  %1211 = vmatprep.subr.mxu1 %v3264_v51  ;;  %v3599_v44 = vld [vmem:[#allocation6 + $0x1f8] sm:$0xff] }
 0x272   :  { %1141 = vmatpush1.msra.mxu0 %v3248_v46  ;;  %1212 = vmatpush1.msra.mxu1 %v3270_v53  ;;  %4309 = vst [vmem:[#allocation13_spill] sm:$0xff] %v3599_v44 }
 0x273   :  { %1142 = vmatprep.subr.mxu0 %v3254_v48  ;;  %1213 = vmatprep.subr.mxu1 %v3276_v55 }
 0x274   :  { %1143 = vmatpush1.msra.mxu0 %v3260_v50  ;;  %1214 = vmatpush1.msra.mxu1 %v3282_v57  ;;  %v839_v57 = vld [vmem:[#allocation2 + $0x2] ss:$8 sm:$0xf] }
 0x275   :  { %1144 = vmatprep.subr.mxu0 %v3266_v52  ;;  %1215 = vmatprep.subr.mxu1 %v3288_v59 }
 0x276   :  { %1145 = vmatpush1.msra.mxu0 %v3272_v54  ;;  %1216 = vmatpush1.msra.mxu1 %v3294_v61 }
 0x277   :  { %1146 = vmatprep.subr.mxu0 %v3278_v56  ;;  %1217 = vmatprep.subr.mxu1 %v3300_v63 }
 0x278   :  { %1147 = vmatpush1.msra.mxu0 %v3284_v58  ;;  %1218 = vmatpush1.msra.mxu1 %v4286_v12  ;;  %v841_v58 = vld [vmem:[#allocation2 + $0x22] ss:$8 sm:$0xf] }
 0x279   :  { %1148 = vmatprep.subr.mxu0 %v4287_v13  ;;  %1219 = vmatprep.subr.mxu1 %v4288_v16 }
 0x27a   :  { %1149 = vmatpush1.msra.mxu0 %v4289_v18  ;;  %1220 = vmatpush1.msra.mxu1 %v4290_v23 }
 0x27b   :  { %1150 = vmatprep.subr.mxu0 %v4291_v25  ;;  %1221 = vmatprep.subr.mxu1 %v4292_v27 }
 0x27c   :  { %1151 = vmatpush1.msra.mxu0 %v4293_v28  ;;  %1222 = vmatpush1.msra.mxu1 %v4294_v29 }
 0x27d   :  { %1152 = vmatprep.subr.mxu0 %v4295_v30  ;;  %1223 = vmatprep.subr.mxu1 %v4296_v31 }
 0x27e   :  { %1153 = vmatpush1.msra.mxu0 %v4297_v32  ;;  %1224 = vmatpush1.msra.mxu1 %v4298_v33 }
 0x27f   :  { %1154 = vmatprep.subr.mxu0 %v4299_v34  ;;  %1225 = vmatprep.subr.mxu1 %v4300_v35 }
 0x280   :  { %1155 = vmatpush1.msra.mxu0 %v4301_v36  ;;  %1226 = vmatpush1.msra.mxu1 %v4302_v37 }
 0x281   :  { %1156 = vmatprep.subr.mxu0 %v4303_v38  ;;  %1227 = vmatprep.subr.mxu1 %v4304_v39 }
 0x282   :  { %1157 = vmatpush1.msra.mxu0 %v4305_v40  ;;  %1190 = vmatprep.mubr.f32.mxu0 %v4306_v41 }
 0x283   :  { %1228 = vmatpush1.msra.mxu1 %v4307_v42  ;;  %1261 = vmatprep.mubr.f32.mxu1 %v4306_v41 }
 0x284   :  { %1392 = vmatprep.subr.mxu0 %v3596_v43  ;;  %1463 = vmatprep.subr.mxu1 %v3599_v44 }
 0x323   :  { %v926_v45 = vpop.f32.mrf.mxu0  ;;  %v997_v46 = vpop.f32.mrf.mxu1 }
 0x325   :  { %v928_v47 = vpop.f32.mrf.mxu0  ;;  %v999_v48 = vpop.f32.mrf.mxu1 }
 0x326   :  { %v1006_v49 = vcombine.low %v926_v45, %v928_v47  ;;  %v1007_v50 = vcombine.low %v997_v46, %v999_v48  ;;  %v3616_v46 = vld [vmem:[#allocation6 + $0x1e0] sm:$0xff]  ;;  %v3619_v47 = vld [vmem:[#allocation6 + $0x1f0] sm:$0xff]  ;;  %v3622_v48 = vld [vmem:[#allocation6 + $0x1c8] sm:$0xff] }
 0x328   :  { %v1014_v51 = vrot.slane %v1006_v49, %v3438_v11  ;;  %v1021_v52 = vrot.slane %v1007_v50, %v3438_v11  ;;  %v3625_v49 = vld [vmem:[#allocation6 + $0x1d8] sm:$0xff]  ;;  %v3628_v50 = vld [vmem:[#allocation6 + $0x1c0] sm:$0xff] }
 0x32a   :  { %v1022_v53 = vcombine.low %v1014_v51, %v1021_v52  ;;  %v1023_v54 = vcombine.high %v1014_v51, %v1021_v52  ;;  %v3631_v51 = vld [vmem:[#allocation6 + $0x1d0] sm:$0xff]  ;;  %v3634_v52 = vld [vmem:[#allocation6 + $0x1a8] sm:$0xff] }
 0x32c   :  { %v1030_v55 = vrot.slane %v1022_v53, %v3438_v11  ;;  %v1037_v56 = vrot.slane %v1023_v54, %v3438_v11  ;;  %v3637_v53 = vld [vmem:[#allocation6 + $0x1b8] sm:$0xff]  ;;  %v3640_v54 = vld [vmem:[#allocation6 + $0x1a0] sm:$0xff] }
 0x32e   :  { %v1040_v59 = vadd.f32 %v1030_v55, %v839_v57  ;;  %v1041_v61 = vadd.f32 %v1037_v56, %v841_v58  ;;  %v3643_v55 = vld [vmem:[#allocation6 + $0x1b0] sm:$0xff]  ;;  %v3646_v56 = vld [vmem:[#allocation6 + $0x188] sm:$0xff]  ;;  %v3649_v57 = vld [vmem:[#allocation6 + $0x198] sm:$0xff] }
 0x32f   :  { %v3652_v58 = vld [vmem:[#allocation6 + $0x180] sm:$0xff] }
 0x330   :  { %v2579_v63 = vmul.f32 -1.442695, %v1040_v59  ;;  %v2580_v5 = vmul.f32 -1.442695, %v1041_v61  ;;  %v1056_v24 = vrot.slane %v1040_v59, 1  ;;  %v1057_v14 = vrot.slane %v1041_v61, 1 }
 0x331   :  { %v1078_v15 = vrot.slane %v1040_v59, 3  ;;  %v1079_v62 = vrot.slane %v1041_v61, 3  ;;  %v1072_v8 = vrot.slane %v1040_v59, 2  ;;  %v1073_v17 = vrot.slane %v1041_v61, 2  ;;  %v3655_v59 = vld [vmem:[#allocation6 + $0x190] sm:$0xff]  ;;  %v3658_v61 = vld [vmem:[#allocation6 + $0x168] sm:$0xff] }
 0x332   :  { %2742 = vpow2.f32 %v2579_v63  ;;  %v2581_v3 = vmul.f32 -1.442695, %v1056_v24  ;;  %v2582_v10 = vmul.f32 -1.442695, %v1057_v14  ;;  %v3661_v63 = vld [vmem:[#allocation6 + $0x178] sm:$0xff]  ;;  %v3667_v24 = vld [vmem:[#allocation6 + $0x170] sm:$0xff] }
 0x333   :  { %2744 = vpow2.f32 %v2580_v5  ;;  %v2583_v7 = vmul.f32 -1.442695, %v1078_v15  ;;  %v2584_v6 = vmul.f32 -1.442695, %v1079_v62  ;;  %v3664_v5 = vld [vmem:[#allocation6 + $0x160] sm:$0xff]  ;;  %v3670_v14 = vld [vmem:[#allocation6 + $0x148] sm:$0xff] }
 0x334   :  { %2746 = vpow2.f32 %v2581_v3  ;;  %v3673_v3 = vld [vmem:[#allocation6 + $0x158] sm:$0xff]  ;;  %v3679_v15 = vld [vmem:[#allocation6 + $0x150] sm:$0xff]  ;;  %v3682_v62 = vld [vmem:[#allocation6 + $0x128] sm:$0xff] }
 0x335   :  { %2748 = vpow2.f32 %v2582_v10  ;;  %v3676_v10 = vld [vmem:[#allocation6 + $0x140] sm:$0xff] }
 0x336   :  { %2750 = vtanh.f32 %v1072_v8  ;;  %v3685_v8 = vld [vmem:[#allocation6 + $0x138] sm:$0xff] }
 0x337   :  { %2752 = vtanh.f32 %v1073_v17  ;;  %v3688_v17 = vld [vmem:[#allocation6 + $0x120] sm:$0xff] }
 0x338   :  { %2754 = vpow2.f32 %v2583_v7  ;;  %v3691_v7 = vld [vmem:[#allocation6 + $0x130] sm:$0xff] }
 0x339   :  { %2756 = vpow2.f32 %v2584_v6  ;;  %v3694_v6 = vld [vmem:[#allocation6 + $0x108] sm:$0xff] }
 0x33f   :  { %v2743_v9 = vpop.eup %2742 }
 0x340   :  { %v2745_v60 = vpop.eup %2744  ;;  %v1048_v2 = vadd.f32 1.0, %v2743_v9  ;;  %v3697_v9 = vld [vmem:[#allocation6 + $0x118] sm:$0xff] }
 0x341   :  { %v2747_v22 = vpop.eup %2746  ;;  %v1049_v26 = vadd.f32 1.0, %v2745_v60  ;;  %v3700_v60 = vld [vmem:[#allocation6 + $0x100] sm:$0xff] }
 0x342   :  { %v2749_v19 = vpop.eup %2748  ;;  %2758 = vrcp.f32 %v1048_v2  ;;  %v1066_v1 = vadd.f32 1.0, %v2747_v22  ;;  %v3703_v2 = vld [vmem:[#allocation6 + $0x110] sm:$0xff]  ;;  %v3706_v22 = vld [vmem:[#allocation6 + $0xe8] sm:$0xff] }
 0x343   :  { %2760 = vrcp.f32 %v1049_v26  ;;  %v1067_v20 = vadd.f32 1.0, %v2749_v19  ;;  %v2751_v4 = vpop.eup %2750  ;;  %v3709_v26 = vld [vmem:[#allocation6 + $0xf8] sm:$0xff]  ;;  %v3712_v19 = vld [vmem:[#allocation6 + $0xe0] sm:$0xff] }
 0x344   :  { %2762 = vrcp.f32 %v1066_v1  ;;  %v2753_v12 = vpop.eup %2752  ;;  %v3715_v1 = vld [vmem:[#allocation6 + $0xf0] sm:$0xff] }
 0x345   :  { %2764 = vrcp.f32 %v1067_v20  ;;  %v2755_v13 = vpop.eup %2754  ;;  %v3718_v20 = vld [vmem:[#allocation6 + $0xc8] sm:$0xff] }
 0x346   :  { %v2757_v16 = vpop.eup %2756  ;;  %v1088_v25 = vadd.f32 1.0, %v2755_v13  ;;  %v3727_v13 = vld [vmem:[#allocation6 + $0xd0] sm:$0xff] }
 0x347   :  { %v1089_v28 = vadd.f32 1.0, %v2757_v16  ;;  %v3730_v16 = vld [vmem:[#allocation6 + $0xa8] sm:$0xff] }
 0x348   :  { %2766 = vrcp.f32 %v1088_v25  ;;  %v3739_v25 = vld [vmem:[#allocation6 + $0xb0] sm:$0xff] }
 0x349   :  { %2768 = vrcp.f32 %v1089_v28  ;;  %4310 = vst [vmem:[#allocation17_spill] sm:$0xff] %v3739_v25  ;;  %v3745_v28 = vld [vmem:[#allocation6 + $0x98] sm:$0xff] }
 0x34a   :  { %4312 = vst [vmem:[#allocation19_spill] sm:$0xff] %v3745_v28 }
 0x34f   :  { %v2759_v18 = vpop.eup %2758 }
 0x350   :  { %v2761_v23 = vpop.eup %2760  ;;  %v1096_v30 = vmul.f32 %v2759_v18, %v2751_v4  ;;  %v3721_v4 = vld [vmem:[#allocation6 + $0xd8] sm:$0xff] }
 0x351   :  { %v2763_v27 = vpop.eup %2762  ;;  %v1097_v32 = vmul.f32 %v2761_v23, %v2753_v12  ;;  %v3724_v12 = vld [vmem:[#allocation6 + $0xc0] sm:$0xff]  ;;  %v3733_v18 = vld [vmem:[#allocation6 + $0xb8] sm:$0xff] }
 0x352   :  { %v2765_v29 = vpop.eup %2764  ;;  %v1094_v31 = vmul.f32 %v2763_v27, %v3524_v21  ;;  %v3736_v23 = vld [vmem:[#allocation6 + $0xa0] sm:$0xff]  ;;  %v3742_v27 = vld [vmem:[#allocation6 + $0x88] sm:$0xff] }
 0x353   :  { %v1095_v33 = vmul.f32 %v2765_v29, %v3526_v0  ;;  %4311 = vst [vmem:[#allocation14_spill] sm:$0xff] %v3742_v27  ;;  %v3748_v29 = vld [vmem:[#allocation6 + $0x80] sm:$0xff] }
 0x354   :  { %v3608_v34 = vadd.f32 %v1096_v30, %v1094_v31  ;;  %4313 = vst [vmem:[#allocation15_spill] sm:$0xff] %v3748_v29  ;;  %v3751_v30 = vld [vmem:[#allocation6 + $0x90] sm:$0xff]  ;;  %v3754_v31 = vld [vmem:[#allocation6 + $0x68] sm:$0xff] }
 0x355   :  { %v3610_v35 = vadd.f32 %v1097_v32, %v1095_v33  ;;  %v2767_v36 = vpop.eup %2766  ;;  %4314 = vst [vmem:[#allocation21_spill] sm:$0xff] %v3751_v30  ;;  %4315 = vst [vmem:[#allocation16_spill] sm:$0xff] %v3754_v31  ;;  %v3757_v32 = vld [vmem:[#allocation6 + $0x78] sm:$0xff]  ;;  %v3760_v33 = vld [vmem:[#allocation6 + $0x60] sm:$0xff] }
 0x356   :  { %2770 = vtanh.f32 %v3608_v34  ;;  %v2769_v37 = vpop.eup %2768  ;;  %4316 = vst [vmem:[#allocation23_spill] sm:$0xff] %v3757_v32  ;;  %4317 = vst [vmem:[#allocation18_spill] sm:$0xff] %v3760_v33 }
 0x357   :  { %2772 = vtanh.f32 %v3610_v35 }
 0x363   :  { %v2771_v38 = vpop.eup %2770 }
 0x364   :  { %v2773_v39 = vpop.eup %2772  ;;  %v1102_v40 = vmul.f32 %v2771_v38, %v2767_v36  ;;  %v3763_v36 = vld [vmem:[#allocation6 + $0x70] sm:$0xff]  ;;  %v3769_v38 = vld [vmem:[#allocation6 + $0x58] sm:$0xff] }
 0x365   :  { %v1103_v42 = vmul.f32 %v2773_v39, %v2769_v37  ;;  %4318 = vst [vmem:[#allocation25_spill] sm:$0xff] %v3763_v36  ;;  %v3766_v37 = vld [vmem:[#allocation6 + $0x48] sm:$0xff]  ;;  %4320 = vst [vmem:[#allocation27_spill] sm:$0xff] %v3769_v38  ;;  %v3772_v39 = vld [vmem:[#allocation6 + $0x40] sm:$0xff] }
 0x366   :  { %4319 = vst [vmem:[#allocation20_spill] sm:$0xff] %v3766_v37  ;;  %4321 = vst [vmem:[#allocation22_spill] sm:$0xff] %v3772_v39 }
 0x367   :  { %v1110_v21 = vcombine.low %v1102_v40, %v1103_v42  ;;  %v3775_v40 = vld [vmem:[#allocation6 + $0x50] sm:$0xff]  ;;  %v3778_v42 = vld [vmem:[#allocation6 + $0x28] sm:$0xff] }
 0x368   :  { %4322 = vst [vmem:[#allocation29_spill] sm:$0xff] %v3775_v40  ;;  %4323 = vst [vmem:[#allocation24_spill] sm:$0xff] %v3778_v42 }
 0x369   :  { %v1117_v45 = vrot.slane %v1110_v21, %v3438_v11  ;;  %v3781_v21 = vld [vmem:[#allocation6 + $0x38] sm:$0xff] }
 0x36a   :  { %4324 = vst [vmem:[#allocation31_spill] sm:$0xff] %v3781_v21 }
 0x36b   :  { %v1124_v0 = vrot.slane %v1117_v45, %v3438_v11  ;;  %v3784_v45 = vld [vmem:[#allocation6 + $0x20] sm:$0xff] }
 0x36c   :  { %4325 = vst [vmem:[#allocation26_spill] sm:$0xff] %v3784_v45 }
 0x36d   :  { %1191 = vmatmul.mubr.f32.vlgmr.msra.gmra.mxu0 %v1124_v0  ;;  %1262 = vmatmul.mubr.f32.vlgmr.msra.gmra.mxu1 %v1124_v0  ;;  %v3787_v0 = vld [vmem:[#allocation6 + $0x30] sm:$0xff] }
 0x36e   :  { %1393 = vmatpush1.msra.mxu0 %v3616_v46  ;;  %1464 = vmatpush1.msra.mxu1 %v3619_v47  ;;  %4326 = vst [vmem:[#allocation32_spill] sm:$0xff] %v3787_v0 }
 0x36f   :  { %1394 = vmatprep.subr.mxu0 %v3622_v48  ;;  %1465 = vmatprep.subr.mxu1 %v3625_v49 }
 0x370   :  { %1395 = vmatpush1.msra.mxu0 %v3628_v50  ;;  %1466 = vmatpush1.msra.mxu1 %v3631_v51 }
 0x371   :  { %1396 = vmatprep.subr.mxu0 %v3634_v52  ;;  %1467 = vmatprep.subr.mxu1 %v3637_v53 }
 0x372   :  { %1397 = vmatpush1.msra.mxu0 %v3640_v54  ;;  %1468 = vmatpush1.msra.mxu1 %v3643_v55 }
 0x373   :  { %1398 = vmatprep.subr.mxu0 %v3646_v56  ;;  %1469 = vmatprep.subr.mxu1 %v3649_v57 }
 0x374   :  { %1399 = vmatpush1.msra.mxu0 %v3652_v58  ;;  %1470 = vmatpush1.msra.mxu1 %v3655_v59 }
 0x375   :  { %1400 = vmatprep.subr.mxu0 %v3658_v61  ;;  %1471 = vmatprep.subr.mxu1 %v3661_v63 }
 0x376   :  { %1401 = vmatpush1.msra.mxu0 %v3664_v5  ;;  %1472 = vmatpush1.msra.mxu1 %v3667_v24 }
 0x377   :  { %1402 = vmatprep.subr.mxu0 %v3670_v14  ;;  %1473 = vmatprep.subr.mxu1 %v3673_v3 }
 0x378   :  { %1403 = vmatpush1.msra.mxu0 %v3676_v10  ;;  %1474 = vmatpush1.msra.mxu1 %v3679_v15 }
 0x379   :  { %1404 = vmatprep.subr.mxu0 %v3682_v62  ;;  %1475 = vmatprep.subr.mxu1 %v3685_v8 }
 0x37a   :  { %1405 = vmatpush1.msra.mxu0 %v3688_v17  ;;  %1476 = vmatpush1.msra.mxu1 %v3691_v7 }
 0x37b   :  { %1406 = vmatprep.subr.mxu0 %v3694_v6  ;;  %1477 = vmatprep.subr.mxu1 %v3697_v9 }
 0x37c   :  { %1407 = vmatpush1.msra.mxu0 %v3700_v60  ;;  %1478 = vmatpush1.msra.mxu1 %v3703_v2 }
 0x37d   :  { %1408 = vmatprep.subr.mxu0 %v3706_v22  ;;  %1479 = vmatprep.subr.mxu1 %v3709_v26 }
 0x37e   :  { %1409 = vmatpush1.msra.mxu0 %v3712_v19  ;;  %1480 = vmatpush1.msra.mxu1 %v3715_v1 }
 0x37f   :  { %1410 = vmatprep.subr.mxu0 %v3718_v20  ;;  %1481 = vmatprep.subr.mxu1 %v3721_v4 }
 0x380   :  { %1411 = vmatpush1.msra.mxu0 %v3724_v12  ;;  %1482 = vmatpush1.msra.mxu1 %v3727_v13 }
 0x381   :  { %1412 = vmatprep.subr.mxu0 %v3730_v16  ;;  %1483 = vmatprep.subr.mxu1 %v3733_v18 }
 0x382   :  { %1413 = vmatpush1.msra.mxu0 %v3736_v23  ;;  %1484 = vmatpush1.msra.mxu1 %v3739_v25 }
 0x383   :  { %1414 = vmatprep.subr.mxu0 %v3742_v27  ;;  %1485 = vmatprep.subr.mxu1 %v3745_v28 }
 0x384   :  { %1415 = vmatpush1.msra.mxu0 %v3748_v29  ;;  %1486 = vmatpush1.msra.mxu1 %v3751_v30 }
 0x385   :  { %1416 = vmatprep.subr.mxu0 %v3754_v31  ;;  %1487 = vmatprep.subr.mxu1 %v3757_v32  ;;  %v1105_v31 = vld [vmem:[#allocation2 + $0x3] ss:$8 sm:$0xf] }
 0x386   :  { %1417 = vmatpush1.msra.mxu0 %v3760_v33  ;;  %1488 = vmatpush1.msra.mxu1 %v3763_v36 }
 0x387   :  { %1418 = vmatprep.subr.mxu0 %v3766_v37  ;;  %1489 = vmatprep.subr.mxu1 %v3769_v38 }
 0x388   :  { %1419 = vmatpush1.msra.mxu0 %v3772_v39  ;;  %1490 = vmatpush1.msra.mxu1 %v3775_v40  ;;  %v3790_v39 = vld [vmem:[#allocation6 + $0x8] sm:$0xff]  ;;  %v3793_v40 = vld [vmem:[#allocation6 + $0x18] sm:$0xff] }
 0x389   :  { %1420 = vmatprep.subr.mxu0 %v3778_v42  ;;  %1491 = vmatprep.subr.mxu1 %v3781_v21  ;;  %4327 = vst [vmem:[#allocation28_spill] sm:$0xff] %v3790_v39  ;;  %4328 = vst [vmem:[#allocation33_spill] sm:$0xff] %v3793_v40  ;;  %v3796_v42 = vld [vmem:[#allocation6] sm:$0xff]  ;;  %v3800_v21 = vld [vmem:[#allocation6 + $0x10] sm:$0xff] }
 0x38a   :  { %1421 = vmatpush1.msra.mxu0 %v3784_v45  ;;  %1492 = vmatpush1.msra.mxu1 %v3787_v0  ;;  %4329 = vst [vmem:[#allocation30_spill] sm:$0xff] %v3796_v42  ;;  %4330 = vst [vmem:[#allocation34_spill] sm:$0xff] %v3800_v21 }
 0x38b   :  { %1422 = vmatprep.subr.mxu0 %v3790_v39  ;;  %1493 = vmatprep.subr.mxu1 %v3793_v40 }
 0x38c   :  { %1423 = vmatpush1.msra.mxu0 %v3796_v42  ;;  %1456 = vmatprep.mubr.f32.mxu0 %v4306_v41 }
 0x38d   :  { %1494 = vmatpush1.msra.mxu1 %v3800_v21  ;;  %1527 = vmatprep.mubr.f32.mxu1 %v4306_v41 }
 0x38e   :  { %1658 = vmatprep.subr.mxu0 %v3596_v43  ;;  %1729 = vmatprep.subr.mxu1 %v3599_v44  ;;  %v1107_v43 = vld [vmem:[#allocation2 + $0x23] ss:$8 sm:$0xf] }
 0x42d   :  { %v1192_v39 = vpop.f32.mrf.mxu0  ;;  %v1263_v0 = vpop.f32.mrf.mxu1 }
 0x42f   :  { %v1194_v45 = vpop.f32.mrf.mxu0  ;;  %v1265_v40 = vpop.f32.mrf.mxu1 }
 0x430   :  { %v1272_v38 = vcombine.low %v1192_v39, %v1194_v45  ;;  %v1273_v37 = vcombine.low %v1263_v0, %v1265_v40 }
 0x432   :  { %v1280_v42 = vrot.slane %v1272_v38, %v3438_v11  ;;  %v1287_v36 = vrot.slane %v1273_v37, %v3438_v11 }
 0x434   :  { %v1288_v33 = vcombine.low %v1280_v42, %v1287_v36  ;;  %v1289_v32 = vcombine.high %v1280_v42, %v1287_v36 }
 0x436   :  { %v1296_v21 = vrot.slane %v1288_v33, %v3438_v11  ;;  %v1303_v41 = vrot.slane %v1289_v32, %v3438_v11 }
 0x438   :  { %v1306_v30 = vadd.f32 %v1296_v21, %v1105_v31  ;;  %v1307_v44 = vadd.f32 %v1303_v41, %v1107_v43 }
 0x43a   :  { %v2585_v29 = vmul.f32 -1.442695, %v1306_v30  ;;  %v2586_v28 = vmul.f32 -1.442695, %v1307_v44  ;;  %v1322_v27 = vrot.slane %v1306_v30, 1  ;;  %v1323_v25 = vrot.slane %v1307_v44, 1 }
 0x43b   :  { %v1344_v37 = vrot.slane %v1306_v30, 3  ;;  %v1345_v36 = vrot.slane %v1307_v44, 3  ;;  %v1338_v38 = vrot.slane %v1306_v30, 2  ;;  %v1339_v33 = vrot.slane %v1307_v44, 2 }
 0x43c   :  { %2774 = vpow2.f32 %v2585_v29  ;;  %v2587_v39 = vmul.f32 -1.442695, %v1322_v27  ;;  %v2588_v40 = vmul.f32 -1.442695, %v1323_v25 }
 0x43d   :  { %2776 = vpow2.f32 %v2586_v28  ;;  %v2589_v42 = vmul.f32 -1.442695, %v1344_v37  ;;  %v2590_v32 = vmul.f32 -1.442695, %v1345_v36 }
 0x43e   :  { %2778 = vpow2.f32 %v2587_v39 }
 0x43f   :  { %2780 = vpow2.f32 %v2588_v40 }
 0x440   :  { %2782 = vtanh.f32 %v1338_v38 }
 0x441   :  { %2784 = vtanh.f32 %v1339_v33 }
 0x442   :  { %2786 = vpow2.f32 %v2589_v42 }
 0x443   :  { %2788 = vpow2.f32 %v2590_v32 }
 0x449   :  { %v2775_v45 = vpop.eup %2774 }
 0x44a   :  { %v2777_v41 = vpop.eup %2776  ;;  %v1314_v43 = vadd.f32 1.0, %v2775_v45 }
 0x44b   :  { %v2779_v31 = vpop.eup %2778  ;;  %v1315_v21 = vadd.f32 1.0, %v2777_v41 }
 0x44c   :  { %v2781_v27 = vpop.eup %2780  ;;  %2790 = vrcp.f32 %v1314_v43  ;;  %v1332_v25 = vadd.f32 1.0, %v2779_v31 }
 0x44d   :  { %2792 = vrcp.f32 %v1315_v21  ;;  %v1333_v28 = vadd.f32 1.0, %v2781_v27  ;;  %v2783_v29 = vpop.eup %2782 }
 0x44e   :  { %2794 = vrcp.f32 %v1332_v25  ;;  %v2785_v44 = vpop.eup %2784 }
 0x44f   :  { %2796 = vrcp.f32 %v1333_v28  ;;  %v2787_v30 = vpop.eup %2786 }
 0x450   :  { %v2789_v0 = vpop.eup %2788  ;;  %v1354_v37 = vadd.f32 1.0, %v2787_v30 }
 0x451   :  { %v1355_v38 = vadd.f32 1.0, %v2789_v0  ;;  %v4331_v0 = vld [vmem:[#allocation17_spill] sm:$0xff] }
 0x452   :  { %2798 = vrcp.f32 %v1354_v37  ;;  %v4334_v37 = vld [vmem:[#allocation15_spill] sm:$0xff] }
 0x453   :  { %2800 = vrcp.f32 %v1355_v38  ;;  %v4336_v38 = vld [vmem:[#allocation16_spill] sm:$0xff] }
 0x459   :  { %v2791_v39 = vpop.eup %2790 }
 0x45a   :  { %v2793_v40 = vpop.eup %2792  ;;  %v1362_v42 = vmul.f32 %v2791_v39, %v2783_v29  ;;  %v4332_v39 = vld [vmem:[#allocation14_spill] sm:$0xff] }
 0x45b   :  { %v2795_v36 = vpop.eup %2794  ;;  %v1363_v45 = vmul.f32 %v2793_v40, %v2785_v44  ;;  %v4333_v40 = vld [vmem:[#allocation19_spill] sm:$0xff] }
 0x45c   :  { %v2797_v33 = vpop.eup %2796  ;;  %v1360_v32 = vmul.f32 %v2795_v36, %v3608_v34  ;;  %v4335_v36 = vld [vmem:[#allocation21_spill] sm:$0xff] }
 0x45d   :  { %v1361_v41 = vmul.f32 %v2797_v33, %v3610_v35  ;;  %v4337_v33 = vld [vmem:[#allocation23_spill] sm:$0xff] }
 0x45e   :  { %v3812_v43 = vadd.f32 %v1362_v42, %v1360_v32  ;;  %v4338_v42 = vld [vmem:[#allocation18_spill] sm:$0xff]  ;;  %v4339_v32 = vld [vmem:[#allocation25_spill] sm:$0xff] }
 0x45f   :  { %v3814_v31 = vadd.f32 %v1363_v45, %v1361_v41  ;;  %v2799_v21 = vpop.eup %2798  ;;  %v4340_v45 = vld [vmem:[#allocation20_spill] sm:$0xff]  ;;  %v4341_v41 = vld [vmem:[#allocation27_spill] sm:$0xff] }
 0x460   :  { %2802 = vtanh.f32 %v3812_v43  ;;  %v2801_v27 = vpop.eup %2800 }
 0x461   :  { %2804 = vtanh.f32 %v3814_v31 }
 0x46d   :  { %v2803_v25 = vpop.eup %2802 }
 0x46e   :  { %v2805_v28 = vpop.eup %2804  ;;  %v1368_v29 = vmul.f32 %v2803_v25, %v2799_v21  ;;  %v4342_v21 = vld [vmem:[#allocation22_spill] sm:$0xff]  ;;  %v4344_v25 = vld [vmem:[#allocation24_spill] sm:$0xff] }
 0x46f   :  { %v1369_v30 = vmul.f32 %v2805_v28, %v2801_v27  ;;  %v4343_v27 = vld [vmem:[#allocation29_spill] sm:$0xff]  ;;  %v4345_v28 = vld [vmem:[#allocation31_spill] sm:$0xff] }
 0x471   :  { %v1376_v34 = vcombine.low %v1368_v29, %v1369_v30  ;;  %v4346_v29 = vld [vmem:[#allocation26_spill] sm:$0xff]  ;;  %v4347_v30 = vld [vmem:[#allocation32_spill] sm:$0xff] }
 0x473   :  { %v1383_v44 = vrot.slane %v1376_v34, %v3438_v11  ;;  %v4348_v34 = vld [vmem:[#allocation28_spill] sm:$0xff] }
 0x475   :  { %v1390_v35 = vrot.slane %v1383_v44, %v3438_v11  ;;  %v4349_v44 = vld [vmem:[#allocation33_spill] sm:$0xff] }
 0x477   :  { %1457 = vmatmul.mubr.f32.vlgmr.msra.gmra.mxu0 %v1390_v35  ;;  %1528 = vmatmul.mubr.f32.vlgmr.msra.gmra.mxu1 %v1390_v35  ;;  %v4350_v35 = vld [vmem:[#allocation30_spill] sm:$0xff] }
 0x478   :  { %1659 = vmatpush1.msra.mxu0 %v3616_v46  ;;  %1730 = vmatpush1.msra.mxu1 %v3619_v47 }
 0x479   :  { %1660 = vmatprep.subr.mxu0 %v3622_v48  ;;  %1731 = vmatprep.subr.mxu1 %v3625_v49 }
 0x47a   :  { %1661 = vmatpush1.msra.mxu0 %v3628_v50  ;;  %1732 = vmatpush1.msra.mxu1 %v3631_v51 }
 0x47b   :  { %1662 = vmatprep.subr.mxu0 %v3634_v52  ;;  %1733 = vmatprep.subr.mxu1 %v3637_v53 }
 0x47c   :  { %1663 = vmatpush1.msra.mxu0 %v3640_v54  ;;  %1734 = vmatpush1.msra.mxu1 %v3643_v55 }
 0x47d   :  { %1664 = vmatprep.subr.mxu0 %v3646_v56  ;;  %1735 = vmatprep.subr.mxu1 %v3649_v57 }
 0x47e   :  { %1665 = vmatpush1.msra.mxu0 %v3652_v58  ;;  %1736 = vmatpush1.msra.mxu1 %v3655_v59 }
 0x47f   :  { %1666 = vmatprep.subr.mxu0 %v3658_v61  ;;  %1737 = vmatprep.subr.mxu1 %v3661_v63 }
 0x480   :  { %1667 = vmatpush1.msra.mxu0 %v3664_v5  ;;  %1738 = vmatpush1.msra.mxu1 %v3667_v24 }
 0x481   :  { %1668 = vmatprep.subr.mxu0 %v3670_v14  ;;  %1739 = vmatprep.subr.mxu1 %v3673_v3 }
 0x482   :  { %1669 = vmatpush1.msra.mxu0 %v3676_v10  ;;  %1740 = vmatpush1.msra.mxu1 %v3679_v15 }
 0x483   :  { %1670 = vmatprep.subr.mxu0 %v3682_v62  ;;  %1741 = vmatprep.subr.mxu1 %v3685_v8 }
 0x484   :  { %1671 = vmatpush1.msra.mxu0 %v3688_v17  ;;  %1742 = vmatpush1.msra.mxu1 %v3691_v7 }
 0x485   :  { %1672 = vmatprep.subr.mxu0 %v3694_v6  ;;  %1743 = vmatprep.subr.mxu1 %v3697_v9 }
 0x486   :  { %1673 = vmatpush1.msra.mxu0 %v3700_v60  ;;  %1744 = vmatpush1.msra.mxu1 %v3703_v2 }
 0x487   :  { %1674 = vmatprep.subr.mxu0 %v3706_v22  ;;  %1745 = vmatprep.subr.mxu1 %v3709_v26 }
 0x488   :  { %1675 = vmatpush1.msra.mxu0 %v3712_v19  ;;  %1746 = vmatpush1.msra.mxu1 %v3715_v1 }
 0x489   :  { %1676 = vmatprep.subr.mxu0 %v3718_v20  ;;  %1747 = vmatprep.subr.mxu1 %v3721_v4 }
 0x48a   :  { %1677 = vmatpush1.msra.mxu0 %v3724_v12  ;;  %1748 = vmatpush1.msra.mxu1 %v3727_v13 }
 0x48b   :  { %1678 = vmatprep.subr.mxu0 %v3730_v16  ;;  %1749 = vmatprep.subr.mxu1 %v3733_v18 }
 0x48c   :  { %1679 = vmatpush1.msra.mxu0 %v3736_v23  ;;  %1750 = vmatpush1.msra.mxu1 %v4331_v0 }
 0x48d   :  { %1680 = vmatprep.subr.mxu0 %v4332_v39  ;;  %1751 = vmatprep.subr.mxu1 %v4333_v40 }
 0x48e   :  { %1681 = vmatpush1.msra.mxu0 %v4334_v37  ;;  %1752 = vmatpush1.msra.mxu1 %v4335_v36 }
 0x48f   :  { %1682 = vmatprep.subr.mxu0 %v4336_v38  ;;  %1753 = vmatprep.subr.mxu1 %v4337_v33  ;;  %v1371_v38 = vld [vmem:[#allocation2 + $0x4] ss:$8 sm:$0xf] }
 0x490   :  { %1683 = vmatpush1.msra.mxu0 %v4338_v42  ;;  %1754 = vmatpush1.msra.mxu1 %v4339_v32 }
 0x491   :  { %1684 = vmatprep.subr.mxu0 %v4340_v45  ;;  %1755 = vmatprep.subr.mxu1 %v4341_v41  ;;  %v4351_v45 = vmov 0.0   ;;  %v4352_v41 = vld [vmem:[#allocation34_spill] sm:$0xff] }
 0x492   :  { %1685 = vmatpush1.msra.mxu0 %v4342_v21  ;;  %1756 = vmatpush1.msra.mxu1 %v4343_v27  ;;  %v4353_v27 = vld [vmem:[#allocation12_spill] sm:$0xff] }
 0x493   :  { %1686 = vmatprep.subr.mxu0 %v4344_v25  ;;  %1757 = vmatprep.subr.mxu1 %v4345_v28  ;;  %v4354_v25 = vld [vmem:[#allocation13_spill] sm:$0xff] }
 0x494   :  { %1687 = vmatpush1.msra.mxu0 %v4346_v29  ;;  %1758 = vmatpush1.msra.mxu1 %v4347_v30 }
 0x495   :  { %1688 = vmatprep.subr.mxu0 %v4348_v34  ;;  %1759 = vmatprep.subr.mxu1 %v4349_v44 }
 0x496   :  { %1689 = vmatpush1.msra.mxu0 %v4350_v35  ;;  %1722 = vmatprep.mubr.f32.mxu0 %v4351_v45 }
 0x497   :  { %1760 = vmatpush1.msra.mxu1 %v4352_v41  ;;  %1793 = vmatprep.mubr.f32.mxu1 %v4351_v45 }
 0x498   :  { %1924 = vmatprep.subr.mxu0 %v4353_v27  ;;  %1995 = vmatprep.subr.mxu1 %v4354_v25  ;;  %v1373_v27 = vld [vmem:[#allocation2 + $0x24] ss:$8 sm:$0xf] }
 0x537   :  { %v1458_v28 = vpop.f32.mrf.mxu0  ;;  %v1529_v29 = vpop.f32.mrf.mxu1 }
 0x539   :  { %v1460_v21 = vpop.f32.mrf.mxu0  ;;  %v1531_v30 = vpop.f32.mrf.mxu1 }
 0x53a   :  { %v1538_v32 = vcombine.low %v1458_v28, %v1460_v21  ;;  %v1539_v34 = vcombine.low %v1529_v29, %v1531_v30 }
 0x53c   :  { %v1546_v44 = vrot.slane %v1538_v32, %v3438_v11  ;;  %v1553_v35 = vrot.slane %v1539_v34, %v3438_v11 }
 0x53e   :  { %v1554_v42 = vcombine.low %v1546_v44, %v1553_v35  ;;  %v1555_v33 = vcombine.high %v1546_v44, %v1553_v35 }
 0x540   :  { %v1562_v41 = vrot.slane %v1554_v42, %v3438_v11  ;;  %v1569_v45 = vrot.slane %v1555_v33, %v3438_v11 }
 0x542   :  { %v1572_v36 = vadd.f32 %v1562_v41, %v1371_v38  ;;  %v1573_v25 = vadd.f32 %v1569_v45, %v1373_v27 }
 0x544   :  { %v2591_v37 = vmul.f32 -1.442695, %v1572_v36  ;;  %v2592_v40 = vmul.f32 -1.442695, %v1573_v25  ;;  %v1588_v39 = vrot.slane %v1572_v36, 1  ;;  %v1589_v0 = vrot.slane %v1573_v25, 1 }
 0x545   :  { %v1610_v32 = vrot.slane %v1572_v36, 3  ;;  %v1611_v29 = vrot.slane %v1573_v25, 3  ;;  %v1604_v30 = vrot.slane %v1572_v36, 2  ;;  %v1605_v42 = vrot.slane %v1573_v25, 2 }
 0x546   :  { %2806 = vpow2.f32 %v2591_v37  ;;  %v2593_v21 = vmul.f32 -1.442695, %v1588_v39  ;;  %v2594_v28 = vmul.f32 -1.442695, %v1589_v0 }
 0x547   :  { %2808 = vpow2.f32 %v2592_v40  ;;  %v2595_v34 = vmul.f32 -1.442695, %v1610_v32  ;;  %v2596_v33 = vmul.f32 -1.442695, %v1611_v29 }
 0x548   :  { %2810 = vpow2.f32 %v2593_v21 }
 0x549   :  { %2812 = vpow2.f32 %v2594_v28 }
 0x54a   :  { %2814 = vtanh.f32 %v1604_v30 }
 0x54b   :  { %2816 = vtanh.f32 %v1605_v42 }
 0x54c   :  { %2818 = vpow2.f32 %v2595_v34 }
 0x54d   :  { %2820 = vpow2.f32 %v2596_v33 }
 0x553   :  { %v2807_v44 = vpop.eup %2806 }
 0x554   :  { %v2809_v38 = vpop.eup %2808  ;;  %v1580_v45 = vadd.f32 1.0, %v2807_v44 }
 0x555   :  { %v2811_v41 = vpop.eup %2810  ;;  %v1581_v27 = vadd.f32 1.0, %v2809_v38 }
 0x556   :  { %v2813_v39 = vpop.eup %2812  ;;  %2822 = vrcp.f32 %v1580_v45  ;;  %v1598_v0 = vadd.f32 1.0, %v2811_v41 }
 0x557   :  { %2824 = vrcp.f32 %v1581_v27  ;;  %v1599_v40 = vadd.f32 1.0, %v2813_v39  ;;  %v2815_v37 = vpop.eup %2814 }
 0x558   :  { %2826 = vrcp.f32 %v1598_v0  ;;  %v2817_v36 = vpop.eup %2816 }
 0x559   :  { %2828 = vrcp.f32 %v1599_v40  ;;  %v2819_v25 = vpop.eup %2818 }
 0x55a   :  { %v2821_v35 = vpop.eup %2820  ;;  %v1620_v32 = vadd.f32 1.0, %v2819_v25 }
 0x55b   :  { %v1621_v30 = vadd.f32 1.0, %v2821_v35  ;;  %v4355_v35 = vld [vmem:[#allocation17_spill] sm:$0xff] }
 0x55c   :  { %2830 = vrcp.f32 %v1620_v32  ;;  %v4358_v32 = vld [vmem:[#allocation15_spill] sm:$0xff] }
 0x55d   :  { %2832 = vrcp.f32 %v1621_v30  ;;  %v4360_v30 = vld [vmem:[#allocation16_spill] sm:$0xff] }
 0x563   :  { %v2823_v21 = vpop.eup %2822 }
 0x564   :  { %v2825_v28 = vpop.eup %2824  ;;  %v1628_v34 = vmul.f32 %v2823_v21, %v2815_v37  ;;  %v4356_v21 = vld [vmem:[#allocation14_spill] sm:$0xff] }
 0x565   :  { %v2827_v29 = vpop.eup %2826  ;;  %v1629_v44 = vmul.f32 %v2825_v28, %v2817_v36  ;;  %v4357_v28 = vld [vmem:[#allocation19_spill] sm:$0xff] }
 0x566   :  { %v2829_v42 = vpop.eup %2828  ;;  %v1626_v33 = vmul.f32 %v2827_v29, %v3812_v43  ;;  %v4359_v29 = vld [vmem:[#allocation21_spill] sm:$0xff] }
 0x567   :  { %v1627_v38 = vmul.f32 %v2829_v42, %v3814_v31  ;;  %v4361_v42 = vld [vmem:[#allocation23_spill] sm:$0xff] }
 0x568   :  { %v3892_v45 = vadd.f32 %v1628_v34, %v1626_v33  ;;  %v4362_v34 = vld [vmem:[#allocation18_spill] sm:$0xff]  ;;  %v4363_v33 = vld [vmem:[#allocation25_spill] sm:$0xff] }
 0x569   :  { %v3894_v41 = vadd.f32 %v1629_v44, %v1627_v38  ;;  %v2831_v27 = vpop.eup %2830  ;;  %v4364_v44 = vld [vmem:[#allocation20_spill] sm:$0xff]  ;;  %v4365_v38 = vld [vmem:[#allocation27_spill] sm:$0xff] }
 0x56a   :  { %2834 = vtanh.f32 %v3892_v45  ;;  %v2833_v39 = vpop.eup %2832 }
 0x56b   :  { %2836 = vtanh.f32 %v3894_v41 }
 0x577   :  { %v2835_v0 = vpop.eup %2834 }
 0x578   :  { %v2837_v40 = vpop.eup %2836  ;;  %v1634_v37 = vmul.f32 %v2835_v0, %v2831_v27  ;;  %v4366_v27 = vld [vmem:[#allocation22_spill] sm:$0xff]  ;;  %v4368_v0 = vld [vmem:[#allocation24_spill] sm:$0xff] }
 0x579   :  { %v1635_v25 = vmul.f32 %v2837_v40, %v2833_v39  ;;  %v4367_v39 = vld [vmem:[#allocation29_spill] sm:$0xff]  ;;  %v4369_v40 = vld [vmem:[#allocation31_spill] sm:$0xff] }
 0x57b   :  { %v1642_v43 = vcombine.low %v1634_v37, %v1635_v25  ;;  %v4370_v37 = vld [vmem:[#allocation26_spill] sm:$0xff]  ;;  %v4371_v25 = vld [vmem:[#allocation32_spill] sm:$0xff] }
 0x57d   :  { %v1649_v36 = vrot.slane %v1642_v43, %v3438_v11  ;;  %v4372_v43 = vld [vmem:[#allocation28_spill] sm:$0xff] }
 0x57f   :  { %v1656_v31 = vrot.slane %v1649_v36, %v3438_v11  ;;  %v4373_v36 = vld [vmem:[#allocation33_spill] sm:$0xff] }
 0x581   :  { %1723 = vmatmul.mubr.f32.vlgmr.msra.gmra.mxu0 %v1656_v31  ;;  %1794 = vmatmul.mubr.f32.vlgmr.msra.gmra.mxu1 %v1656_v31  ;;  %v4374_v31 = vld [vmem:[#allocation30_spill] sm:$0xff] }
 0x582   :  { %1925 = vmatpush1.msra.mxu0 %v3616_v46  ;;  %1996 = vmatpush1.msra.mxu1 %v3619_v47 }
 0x583   :  { %1926 = vmatprep.subr.mxu0 %v3622_v48  ;;  %1997 = vmatprep.subr.mxu1 %v3625_v49 }
 0x584   :  { %1927 = vmatpush1.msra.mxu0 %v3628_v50  ;;  %1998 = vmatpush1.msra.mxu1 %v3631_v51 }
 0x585   :  { %1928 = vmatprep.subr.mxu0 %v3634_v52  ;;  %1999 = vmatprep.subr.mxu1 %v3637_v53 }
 0x586   :  { %1929 = vmatpush1.msra.mxu0 %v3640_v54  ;;  %2000 = vmatpush1.msra.mxu1 %v3643_v55 }
 0x587   :  { %1930 = vmatprep.subr.mxu0 %v3646_v56  ;;  %2001 = vmatprep.subr.mxu1 %v3649_v57 }
 0x588   :  { %1931 = vmatpush1.msra.mxu0 %v3652_v58  ;;  %2002 = vmatpush1.msra.mxu1 %v3655_v59 }
 0x589   :  { %1932 = vmatprep.subr.mxu0 %v3658_v61  ;;  %2003 = vmatprep.subr.mxu1 %v3661_v63 }
 0x58a   :  { %1933 = vmatpush1.msra.mxu0 %v3664_v5  ;;  %2004 = vmatpush1.msra.mxu1 %v3667_v24 }
 0x58b   :  { %1934 = vmatprep.subr.mxu0 %v3670_v14  ;;  %2005 = vmatprep.subr.mxu1 %v3673_v3 }
 0x58c   :  { %1935 = vmatpush1.msra.mxu0 %v3676_v10  ;;  %2006 = vmatpush1.msra.mxu1 %v3679_v15 }
 0x58d   :  { %1936 = vmatprep.subr.mxu0 %v3682_v62  ;;  %2007 = vmatprep.subr.mxu1 %v3685_v8 }
 0x58e   :  { %1937 = vmatpush1.msra.mxu0 %v3688_v17  ;;  %2008 = vmatpush1.msra.mxu1 %v3691_v7 }
 0x58f   :  { %1938 = vmatprep.subr.mxu0 %v3694_v6  ;;  %2009 = vmatprep.subr.mxu1 %v3697_v9 }
 0x590   :  { %1939 = vmatpush1.msra.mxu0 %v3700_v60  ;;  %2010 = vmatpush1.msra.mxu1 %v3703_v2 }
 0x591   :  { %1940 = vmatprep.subr.mxu0 %v3706_v22  ;;  %2011 = vmatprep.subr.mxu1 %v3709_v26 }
 0x592   :  { %1941 = vmatpush1.msra.mxu0 %v3712_v19  ;;  %2012 = vmatpush1.msra.mxu1 %v3715_v1 }
 0x593   :  { %1942 = vmatprep.subr.mxu0 %v3718_v20  ;;  %2013 = vmatprep.subr.mxu1 %v3721_v4 }
 0x594   :  { %1943 = vmatpush1.msra.mxu0 %v3724_v12  ;;  %2014 = vmatpush1.msra.mxu1 %v3727_v13 }
 0x595   :  { %1944 = vmatprep.subr.mxu0 %v3730_v16  ;;  %2015 = vmatprep.subr.mxu1 %v3733_v18 }
 0x596   :  { %1945 = vmatpush1.msra.mxu0 %v3736_v23  ;;  %2016 = vmatpush1.msra.mxu1 %v4355_v35 }
 0x597   :  { %1946 = vmatprep.subr.mxu0 %v4356_v21  ;;  %2017 = vmatprep.subr.mxu1 %v4357_v28 }
 0x598   :  { %1947 = vmatpush1.msra.mxu0 %v4358_v32  ;;  %2018 = vmatpush1.msra.mxu1 %v4359_v29 }
 0x599   :  { %1948 = vmatprep.subr.mxu0 %v4360_v30  ;;  %2019 = vmatprep.subr.mxu1 %v4361_v42  ;;  %v1637_v30 = vld [vmem:[#allocation2 + $0x5] ss:$8 sm:$0xf] }
 0x59a   :  { %1949 = vmatpush1.msra.mxu0 %v4362_v34  ;;  %2020 = vmatpush1.msra.mxu1 %v4363_v33 }
 0x59b   :  { %1950 = vmatprep.subr.mxu0 %v4364_v44  ;;  %2021 = vmatprep.subr.mxu1 %v4365_v38  ;;  %v4375_v44 = vmov 0.0   ;;  %v4376_v38 = vld [vmem:[#allocation34_spill] sm:$0xff] }
 0x59c   :  { %1951 = vmatpush1.msra.mxu0 %v4366_v27  ;;  %2022 = vmatpush1.msra.mxu1 %v4367_v39  ;;  %v4377_v39 = vld [vmem:[#allocation12_spill] sm:$0xff] }
 0x59d   :  { %1952 = vmatprep.subr.mxu0 %v4368_v0  ;;  %2023 = vmatprep.subr.mxu1 %v4369_v40  ;;  %v4378_v0 = vld [vmem:[#allocation13_spill] sm:$0xff] }
 0x59e   :  { %1953 = vmatpush1.msra.mxu0 %v4370_v37  ;;  %2024 = vmatpush1.msra.mxu1 %v4371_v25 }
 0x59f   :  { %1954 = vmatprep.subr.mxu0 %v4372_v43  ;;  %2025 = vmatprep.subr.mxu1 %v4373_v36 }
 0x5a0   :  { %1955 = vmatpush1.msra.mxu0 %v4374_v31  ;;  %1988 = vmatprep.mubr.f32.mxu0 %v4375_v44 }
 0x5a1   :  { %2026 = vmatpush1.msra.mxu1 %v4376_v38  ;;  %2059 = vmatprep.mubr.f32.mxu1 %v4375_v44 }
 0x5a2   :  { %2190 = vmatprep.subr.mxu0 %v4377_v39  ;;  %2261 = vmatprep.subr.mxu1 %v4378_v0  ;;  %v1639_v39 = vld [vmem:[#allocation2 + $0x25] ss:$8 sm:$0xf] }
 0x641   :  { %v1724_v40 = vpop.f32.mrf.mxu0  ;;  %v1795_v37 = vpop.f32.mrf.mxu1 }
 0x643   :  { %v1726_v27 = vpop.f32.mrf.mxu0  ;;  %v1797_v25 = vpop.f32.mrf.mxu1 }
 0x644   :  { %v1804_v33 = vcombine.low %v1724_v40, %v1726_v27  ;;  %v1805_v43 = vcombine.low %v1795_v37, %v1797_v25 }
 0x646   :  { %v1812_v36 = vrot.slane %v1804_v33, %v3438_v11  ;;  %v1819_v31 = vrot.slane %v1805_v43, %v3438_v11 }
 0x648   :  { %v1820_v34 = vcombine.low %v1812_v36, %v1819_v31  ;;  %v1821_v42 = vcombine.high %v1812_v36, %v1819_v31 }
 0x64a   :  { %v1828_v38 = vrot.slane %v1820_v34, %v3438_v11  ;;  %v1835_v44 = vrot.slane %v1821_v42, %v3438_v11 }
 0x64c   :  { %v1838_v29 = vadd.f32 %v1828_v38, %v1637_v30  ;;  %v1839_v0 = vadd.f32 %v1835_v44, %v1639_v39 }
 0x64e   :  { %v2597_v32 = vmul.f32 -1.442695, %v1838_v29  ;;  %v2598_v28 = vmul.f32 -1.442695, %v1839_v0  ;;  %v1854_v21 = vrot.slane %v1838_v29, 1  ;;  %v1855_v35 = vrot.slane %v1839_v0, 1 }
 0x64f   :  { %v1876_v33 = vrot.slane %v1838_v29, 3  ;;  %v1877_v37 = vrot.slane %v1839_v0, 3  ;;  %v1870_v25 = vrot.slane %v1838_v29, 2  ;;  %v1871_v34 = vrot.slane %v1839_v0, 2 }
 0x650   :  { %2838 = vpow2.f32 %v2597_v32  ;;  %v2599_v27 = vmul.f32 -1.442695, %v1854_v21  ;;  %v2600_v40 = vmul.f32 -1.442695, %v1855_v35 }
 0x651   :  { %2840 = vpow2.f32 %v2598_v28  ;;  %v2601_v43 = vmul.f32 -1.442695, %v1876_v33  ;;  %v2602_v42 = vmul.f32 -1.442695, %v1877_v37 }
 0x652   :  { %2842 = vpow2.f32 %v2599_v27 }
 0x653   :  { %2844 = vpow2.f32 %v2600_v40 }
 0x654   :  { %2846 = vtanh.f32 %v1870_v25 }
 0x655   :  { %2848 = vtanh.f32 %v1871_v34 }
 0x656   :  { %2850 = vpow2.f32 %v2601_v43 }
 0x657   :  { %2852 = vpow2.f32 %v2602_v42 }
 0x65d   :  { %v2839_v36 = vpop.eup %2838 }
 0x65e   :  { %v2841_v30 = vpop.eup %2840  ;;  %v1846_v44 = vadd.f32 1.0, %v2839_v36 }
 0x65f   :  { %v2843_v38 = vpop.eup %2842  ;;  %v1847_v31 = vadd.f32 1.0, %v2841_v30 }
 0x660   :  { %v2845_v21 = vpop.eup %2844  ;;  %2854 = vrcp.f32 %v1846_v44  ;;  %v1864_v35 = vadd.f32 1.0, %v2843_v38 }
 0x661   :  { %2856 = vrcp.f32 %v1847_v31  ;;  %v1865_v28 = vadd.f32 1.0, %v2845_v21  ;;  %v2847_v32 = vpop.eup %2846 }
 0x662   :  { %2858 = vrcp.f32 %v1864_v35  ;;  %v2849_v29 = vpop.eup %2848 }
 0x663   :  { %2860 = vrcp.f32 %v1865_v28  ;;  %v2851_v39 = vpop.eup %2850 }
 0x664   :  { %v2853_v0 = vpop.eup %2852  ;;  %v1886_v33 = vadd.f32 1.0, %v2851_v39 }
 0x665   :  { %v1887_v25 = vadd.f32 1.0, %v2853_v0 }
 0x666   :  { %2862 = vrcp.f32 %v1886_v33 }
 0x667   :  { %2864 = vrcp.f32 %v1887_v25 }
 0x66d   :  { %v2855_v27 = vpop.eup %2854 }
 0x66e   :  { %v2857_v40 = vpop.eup %2856  ;;  %v1894_v43 = vmul.f32 %v2855_v27, %v2847_v32 }
 0x66f   :  { %v2859_v37 = vpop.eup %2858  ;;  %v1895_v36 = vmul.f32 %v2857_v40, %v2849_v29 }
 0x670   :  { %v2861_v34 = vpop.eup %2860  ;;  %v1892_v42 = vmul.f32 %v2859_v37, %v3892_v45 }
 0x671   :  { %v1893_v30 = vmul.f32 %v2861_v34, %v3894_v41 }
 0x672   :  { %v3972_v44 = vadd.f32 %v1894_v43, %v1892_v42 }
 0x673   :  { %v3974_v38 = vadd.f32 %v1895_v36, %v1893_v30  ;;  %v2863_v31 = vpop.eup %2862 }
 0x674   :  { %2866 = vtanh.f32 %v3972_v44  ;;  %v2865_v21 = vpop.eup %2864 }
 0x675   :  { %2868 = vtanh.f32 %v3974_v38 }
 0x681   :  { %v2867_v35 = vpop.eup %2866 }
 0x682   :  { %v2869_v28 = vpop.eup %2868  ;;  %v1900_v32 = vmul.f32 %v2867_v35, %v2863_v31 }
 0x683   :  { %v1901_v39 = vmul.f32 %v2869_v28, %v2865_v21 }
 0x685   :  { %v1908_v45 = vcombine.low %v1900_v32, %v1901_v39 }
 0x687   :  { %v1915_v29 = vrot.slane %v1908_v45, %v3438_v11 }
 0x689   :  { %v1922_v41 = vrot.slane %v1915_v29, %v3438_v11 }
 0x68b   :  { %1989 = vmatmul.mubr.f32.vlgmr.msra.gmra.mxu0 %v1922_v41  ;;  %2060 = vmatmul.mubr.f32.vlgmr.msra.gmra.mxu1 %v1922_v41 }
 0x68c   :  { %2191 = vmatpush1.msra.mxu0 %v3616_v46  ;;  %2262 = vmatpush1.msra.mxu1 %v3619_v47  ;;  %v4379_v46 = vld [vmem:[#allocation17_spill] sm:$0xff]  ;;  %v4380_v47 = vld [vmem:[#allocation14_spill] sm:$0xff] }
 0x68d   :  { %2192 = vmatprep.subr.mxu0 %v3622_v48  ;;  %2263 = vmatprep.subr.mxu1 %v3625_v49  ;;  %v4381_v48 = vld [vmem:[#allocation19_spill] sm:$0xff] }
 0x68e   :  { %2193 = vmatpush1.msra.mxu0 %v3628_v50  ;;  %2264 = vmatpush1.msra.mxu1 %v3631_v51  ;;  %v4382_v49 = vld [vmem:[#allocation15_spill] sm:$0xff]  ;;  %v4383_v50 = vld [vmem:[#allocation21_spill] sm:$0xff]  ;;  %v4384_v51 = vld [vmem:[#allocation16_spill] sm:$0xff] }
 0x68f   :  { %2194 = vmatprep.subr.mxu0 %v3634_v52  ;;  %2265 = vmatprep.subr.mxu1 %v3637_v53  ;;  %v4385_v52 = vld [vmem:[#allocation23_spill] sm:$0xff]  ;;  %v4386_v53 = vld [vmem:[#allocation18_spill] sm:$0xff] }
 0x690   :  { %2195 = vmatpush1.msra.mxu0 %v3640_v54  ;;  %2266 = vmatpush1.msra.mxu1 %v3643_v55  ;;  %v4387_v54 = vld [vmem:[#allocation25_spill] sm:$0xff]  ;;  %v4388_v55 = vld [vmem:[#allocation20_spill] sm:$0xff] }
 0x691   :  { %2196 = vmatprep.subr.mxu0 %v3646_v56  ;;  %2267 = vmatprep.subr.mxu1 %v3649_v57  ;;  %v4389_v56 = vld [vmem:[#allocation27_spill] sm:$0xff]  ;;  %v4390_v57 = vld [vmem:[#allocation22_spill] sm:$0xff] }
 0x692   :  { %2197 = vmatpush1.msra.mxu0 %v3652_v58  ;;  %2268 = vmatpush1.msra.mxu1 %v3655_v59  ;;  %v4391_v58 = vld [vmem:[#allocation29_spill] sm:$0xff]  ;;  %v4392_v59 = vld [vmem:[#allocation24_spill] sm:$0xff] }
 0x693   :  { %2198 = vmatprep.subr.mxu0 %v3658_v61  ;;  %2269 = vmatprep.subr.mxu1 %v3661_v63  ;;  %v4393_v61 = vld [vmem:[#allocation31_spill] sm:$0xff]  ;;  %v4394_v63 = vld [vmem:[#allocation26_spill] sm:$0xff] }
 0x694   :  { %2199 = vmatpush1.msra.mxu0 %v3664_v5  ;;  %2270 = vmatpush1.msra.mxu1 %v3667_v24  ;;  %v4395_v5 = vld [vmem:[#allocation32_spill] sm:$0xff] }
 0x695   :  { %2200 = vmatprep.subr.mxu0 %v3670_v14  ;;  %2271 = vmatprep.subr.mxu1 %v3673_v3  ;;  %v4396_v24 = vld [vmem:[#allocation28_spill] sm:$0xff]  ;;  %v4397_v14 = vld [vmem:[#allocation33_spill] sm:$0xff]  ;;  %v4398_v3 = vld [vmem:[#allocation30_spill] sm:$0xff] }
 0x696   :  { %2201 = vmatpush1.msra.mxu0 %v3676_v10  ;;  %2272 = vmatpush1.msra.mxu1 %v3679_v15  ;;  %v4399_v10 = vmov 0.0   ;;  %v4400_v15 = vld [vmem:[#allocation34_spill] sm:$0xff] }
 0x697   :  { %2202 = vmatprep.subr.mxu0 %v3682_v62  ;;  %2273 = vmatprep.subr.mxu1 %v3685_v8 }
 0x698   :  { %2203 = vmatpush1.msra.mxu0 %v3688_v17  ;;  %2274 = vmatpush1.msra.mxu1 %v3691_v7 }
 0x699   :  { %2204 = vmatprep.subr.mxu0 %v3694_v6  ;;  %2275 = vmatprep.subr.mxu1 %v3697_v9 }
 0x69a   :  { %2205 = vmatpush1.msra.mxu0 %v3700_v60  ;;  %2276 = vmatpush1.msra.mxu1 %v3703_v2 }
 0x69b   :  { %2206 = vmatprep.subr.mxu0 %v3706_v22  ;;  %2277 = vmatprep.subr.mxu1 %v3709_v26 }
 0x69c   :  { %2207 = vmatpush1.msra.mxu0 %v3712_v19  ;;  %2278 = vmatpush1.msra.mxu1 %v3715_v1 }
 0x69d   :  { %2208 = vmatprep.subr.mxu0 %v3718_v20  ;;  %2279 = vmatprep.subr.mxu1 %v3721_v4  ;;  %v1903_v20 = vld [vmem:[#allocation2 + $0x6] ss:$8 sm:$0xf] }
 0x69e   :  { %2209 = vmatpush1.msra.mxu0 %v3724_v12  ;;  %2280 = vmatpush1.msra.mxu1 %v3727_v13  ;;  %v1905_v4 = vld [vmem:[#allocation2 + $0x26] ss:$8 sm:$0xf] }
 0x69f   :  { %2210 = vmatprep.subr.mxu0 %v3730_v16  ;;  %2281 = vmatprep.subr.mxu1 %v3733_v18 }
 0x6a0   :  { %2211 = vmatpush1.msra.mxu0 %v3736_v23  ;;  %2282 = vmatpush1.msra.mxu1 %v4379_v46 }
 0x6a1   :  { %2212 = vmatprep.subr.mxu0 %v4380_v47  ;;  %2283 = vmatprep.subr.mxu1 %v4381_v48 }
 0x6a2   :  { %2213 = vmatpush1.msra.mxu0 %v4382_v49  ;;  %2284 = vmatpush1.msra.mxu1 %v4383_v50 }
 0x6a3   :  { %2214 = vmatprep.subr.mxu0 %v4384_v51  ;;  %2285 = vmatprep.subr.mxu1 %v4385_v52 }
 0x6a4   :  { %2215 = vmatpush1.msra.mxu0 %v4386_v53  ;;  %2286 = vmatpush1.msra.mxu1 %v4387_v54 }
 0x6a5   :  { %2216 = vmatprep.subr.mxu0 %v4388_v55  ;;  %2287 = vmatprep.subr.mxu1 %v4389_v56 }
 0x6a6   :  { %2217 = vmatpush1.msra.mxu0 %v4390_v57  ;;  %2288 = vmatpush1.msra.mxu1 %v4391_v58 }
 0x6a7   :  { %2218 = vmatprep.subr.mxu0 %v4392_v59  ;;  %2289 = vmatprep.subr.mxu1 %v4393_v61 }
 0x6a8   :  { %2219 = vmatpush1.msra.mxu0 %v4394_v63  ;;  %2290 = vmatpush1.msra.mxu1 %v4395_v5 }
 0x6a9   :  { %2220 = vmatprep.subr.mxu0 %v4396_v24  ;;  %2291 = vmatprep.subr.mxu1 %v4397_v14 }
 0x6aa   :  { %2221 = vmatpush1.msra.mxu0 %v4398_v3  ;;  %2254 = vmatprep.mubr.f32.mxu0 %v4399_v10 }
 0x6ab   :  { %2292 = vmatpush1.msra.mxu1 %v4400_v15  ;;  %2325 = vmatprep.mubr.f32.mxu1 %v4399_v10  ;;  %v2449_v15 = vld [vmem:[%s4141_s4 + $0x78] sm:$0xff] }
 0x6ac   :  { %2633 = vmatprep.subr.mxu0 %v4399_v10 }
 0x74b   :  { %v1990_v62 = vpop.f32.mrf.mxu0  ;;  %v2061_v8 = vpop.f32.mrf.mxu1 }
 0x74d   :  { %v1992_v17 = vpop.f32.mrf.mxu0  ;;  %v2063_v7 = vpop.f32.mrf.mxu1 }
 0x74e   :  { %v2070_v6 = vcombine.low %v1990_v62, %v1992_v17  ;;  %v2071_v9 = vcombine.low %v2061_v8, %v2063_v7  ;;  %v2448_v62 = vld [vmem:[%s4141_s4 + $0x70] sm:$0xff]  ;;  %v2447_v8 = vld [vmem:[%s4141_s4 + $0x68] sm:$0xff]  ;;  %v2446_v17 = vld [vmem:[%s4141_s4 + $0x60] sm:$0xff] }
 0x74f   :  { %v2445_v7 = vld [vmem:[%s4141_s4 + $0x58] sm:$0xff] }
 0x750   :  { %v2078_v60 = vrot.slane %v2070_v6, %v3438_v11  ;;  %v2085_v2 = vrot.slane %v2071_v9, %v3438_v11  ;;  %v2444_v6 = vld [vmem:[%s4141_s4 + $0x50] sm:$0xff]  ;;  %v2443_v9 = vld [vmem:[%s4141_s4 + $0x48] sm:$0xff] }
 0x752   :  { %v2086_v22 = vcombine.low %v2078_v60, %v2085_v2  ;;  %v2087_v26 = vcombine.high %v2078_v60, %v2085_v2  ;;  %v2442_v60 = vld [vmem:[%s4141_s4 + $0x40] sm:$0xff]  ;;  %v2441_v2 = vld [vmem:[%s4141_s4 + $0x38] sm:$0xff] }
 0x754   :  { %v2094_v19 = vrot.slane %v2086_v22, %v3438_v11  ;;  %v2101_v1 = vrot.slane %v2087_v26, %v3438_v11  ;;  %v2440_v22 = vld [vmem:[%s4141_s4 + $0x30] sm:$0xff]  ;;  %v2439_v26 = vld [vmem:[%s4141_s4 + $0x28] sm:$0xff] }
 0x756   :  { %v2104_v12 = vadd.f32 %v2094_v19, %v1903_v20  ;;  %v2105_v13 = vadd.f32 %v2101_v1, %v1905_v4  ;;  %v2438_v19 = vld [vmem:[%s4141_s4 + $0x20] sm:$0xff]  ;;  %v2437_v1 = vld [vmem:[%s4141_s4 + $0x18] sm:$0xff]  ;;  %v2436_v20 = vld [vmem:[%s4141_s4 + $0x10] sm:$0xff] }
 0x757   :  { %v2435_v4 = vld [vmem:[%s4141_s4 + $0x8] sm:$0xff] }
 0x758   :  { %v2603_v16 = vmul.f32 -1.442695, %v2104_v12  ;;  %v2604_v18 = vmul.f32 -1.442695, %v2105_v13  ;;  %v2120_v23 = vrot.slane %v2104_v12, 1  ;;  %v2121_v0 = vrot.slane %v2105_v13, 1 }
 0x759   :  { %v2142_v33 = vrot.slane %v2104_v12, 3  ;;  %v2143_v37 = vrot.slane %v2105_v13, 3  ;;  %v2136_v25 = vrot.slane %v2104_v12, 2  ;;  %v2137_v34 = vrot.slane %v2105_v13, 2  ;;  %v2434_v12 = vld [vmem:[%s4141_s4] sm:$0xff] }
 0x75a   :  { %2870 = vpow2.f32 %v2603_v16  ;;  %v2605_v27 = vmul.f32 -1.442695, %v2120_v23  ;;  %v2606_v40 = vmul.f32 -1.442695, %v2121_v0 }
 0x75b   :  { %2872 = vpow2.f32 %v2604_v18  ;;  %v2607_v43 = vmul.f32 -1.442695, %v2142_v33  ;;  %v2608_v42 = vmul.f32 -1.442695, %v2143_v37 }
 0x75c   :  { %2874 = vpow2.f32 %v2605_v27 }
 0x75d   :  { %2876 = vpow2.f32 %v2606_v40 }
 0x75e   :  { %2878 = vtanh.f32 %v2136_v25 }
 0x75f   :  { %2880 = vtanh.f32 %v2137_v34 }
 0x760   :  { %2882 = vpow2.f32 %v2607_v43 }
 0x761   :  { %2884 = vpow2.f32 %v2608_v42  ;;  %v2169_v42 = vld [vmem:[#allocation2 + $0x7] ss:$8 sm:$0xf] }
 0x767   :  { %v2871_v36 = vpop.eup %2870 }
 0x768   :  { %v2873_v30 = vpop.eup %2872  ;;  %v2112_v31 = vadd.f32 1.0, %v2871_v36  ;;  %v2171_v36 = vld [vmem:[#allocation2 + $0x27] ss:$8 sm:$0xf] }
 0x769   :  { %v2875_v21 = vpop.eup %2874  ;;  %v2113_v35 = vadd.f32 1.0, %v2873_v30 }
 0x76a   :  { %v2877_v28 = vpop.eup %2876  ;;  %2886 = vrcp.f32 %v2112_v31  ;;  %v2130_v32 = vadd.f32 1.0, %v2875_v21 }
 0x76b   :  { %2888 = vrcp.f32 %v2113_v35  ;;  %v2131_v39 = vadd.f32 1.0, %v2877_v28  ;;  %v2879_v45 = vpop.eup %2878 }
 0x76c   :  { %2890 = vrcp.f32 %v2130_v32  ;;  %v2881_v29 = vpop.eup %2880 }
 0x76d   :  { %2892 = vrcp.f32 %v2131_v39  ;;  %v2883_v41 = vpop.eup %2882 }
 0x76e   :  { %v2885_v46 = vpop.eup %2884  ;;  %v2152_v49 = vadd.f32 1.0, %v2883_v41 }
 0x76f   :  { %v2153_v51 = vadd.f32 1.0, %v2885_v46 }
 0x770   :  { %2894 = vrcp.f32 %v2152_v49 }
 0x771   :  { %2896 = vrcp.f32 %v2153_v51 }
 0x777   :  { %v2887_v47 = vpop.eup %2886 }
 0x778   :  { %v2889_v48 = vpop.eup %2888  ;;  %v2160_v53 = vmul.f32 %v2887_v47, %v2879_v45 }
 0x779   :  { %v2891_v50 = vpop.eup %2890  ;;  %v2161_v55 = vmul.f32 %v2889_v48, %v2881_v29 }
 0x77a   :  { %v2893_v52 = vpop.eup %2892  ;;  %v2158_v54 = vmul.f32 %v2891_v50, %v3972_v44 }
 0x77b   :  { %v2159_v56 = vmul.f32 %v2893_v52, %v3974_v38 }
 0x77c   :  { %v4051_v57 = vadd.f32 %v2160_v53, %v2158_v54 }
 0x77d   :  { %v4053_v58 = vadd.f32 %v2161_v55, %v2159_v56  ;;  %v2895_v59 = vpop.eup %2894 }
 0x77e   :  { %2898 = vtanh.f32 %v4051_v57  ;;  %v2897_v61 = vpop.eup %2896 }
 0x77f   :  { %2900 = vtanh.f32 %v4053_v58 }
 0x78b   :  { %v2899_v63 = vpop.eup %2898 }
 0x78c   :  { %v2901_v5 = vpop.eup %2900  ;;  %v2166_v24 = vmul.f32 %v2899_v63, %v2895_v59 }
 0x78d   :  { %v2167_v14 = vmul.f32 %v2901_v5, %v2897_v61 }
 0x78f   :  { %v2174_v44 = vcombine.low %v2166_v24, %v2167_v14 }
 0x791   :  { %v2181_v3 = vrot.slane %v2174_v44, %v3438_v11 }
 0x793   :  { %v2188_v38 = vrot.slane %v2181_v3, %v3438_v11 }
 0x795   :  { %2255 = vmatmul.mubr.f32.vlgmr.msra.gmra.mxu0 %v2188_v38  ;;  %2326 = vmatmul.mubr.f32.vlgmr.msra.gmra.mxu1 %v2188_v38 }
 0x796   :  { %2634 = vmatpush3.msra.mxu0 %v2449_v15  ;;  %2665 = vmatprep.mubr.msk.f32.mxu0 %vm3072_vm1, %v4399_v10 }
 0x797   :  { %2635 = vmatprep.subr.mxu0 %v4399_v10 }
 0x798   :  { %2636 = vmatpush3.msra.mxu0 %v2448_v62 }
 0x799   :  { %2637 = vmatprep.subr.mxu0 %v4399_v10 }
 0x79a   :  { %2638 = vmatpush3.msra.mxu0 %v2447_v8 }
 0x79b   :  { %2639 = vmatprep.subr.mxu0 %v4399_v10 }
 0x79c   :  { %2640 = vmatpush3.msra.mxu0 %v2446_v17 }
 0x79d   :  { %2641 = vmatprep.subr.mxu0 %v4399_v10 }
 0x79e   :  { %2642 = vmatpush3.msra.mxu0 %v2445_v7 }
 0x79f   :  { %2643 = vmatprep.subr.mxu0 %v4399_v10 }
 0x7a0   :  { %2644 = vmatpush3.msra.mxu0 %v2444_v6 }
 0x7a1   :  { %2645 = vmatprep.subr.mxu0 %v4399_v10 }
 0x7a2   :  { %2646 = vmatpush3.msra.mxu0 %v2443_v9 }
 0x7a3   :  { %2647 = vmatprep.subr.mxu0 %v4399_v10 }
 0x7a4   :  { %2648 = vmatpush3.msra.mxu0 %v2442_v60 }
 0x7a5   :  { %2649 = vmatprep.subr.mxu0 %v4399_v10 }
 0x7a6   :  { %2650 = vmatpush3.msra.mxu0 %v2441_v2 }
 0x7a7   :  { %2651 = vmatprep.subr.mxu0 %v4399_v10 }
 0x7a8   :  { %2652 = vmatpush3.msra.mxu0 %v2440_v22 }
 0x7a9   :  { %2653 = vmatprep.subr.mxu0 %v4399_v10 }
 0x7aa   :  { %2654 = vmatpush3.msra.mxu0 %v2439_v26 }
 0x7ab   :  { %2655 = vmatprep.subr.mxu0 %v4399_v10 }
 0x7ac   :  { %2656 = vmatpush3.msra.mxu0 %v2438_v19 }
 0x7ad   :  { %2657 = vmatprep.subr.mxu0 %v4399_v10 }
 0x7ae   :  { %2658 = vmatpush3.msra.mxu0 %v2437_v1 }
 0x7af   :  { %2659 = vmatprep.subr.mxu0 %v4399_v10 }
 0x7b0   :  { %2660 = vmatpush3.msra.mxu0 %v2436_v20 }
 0x7b1   :  { %2661 = vmatprep.subr.mxu0 %v4399_v10 }
 0x7b2   :  { %2662 = vmatpush3.msra.mxu0 %v2435_v4 }
 0x7b3   :  { %2663 = vmatprep.subr.mxu0 %v4399_v10 }
 0x7b4   :  { %2664 = vmatpush3.msra.mxu0 %v2434_v12 }
 0x855   :  { %v2256_v13 = vpop.f32.mrf.mxu0  ;;  %v2327_v16 = vpop.f32.mrf.mxu1 }
 0x857   :  { %v2258_v18 = vpop.f32.mrf.mxu0  ;;  %v2329_v23 = vpop.f32.mrf.mxu1 }
 0x858   :  { %v2336_v0 = vcombine.low %v2256_v13, %v2258_v18  ;;  %v2337_v27 = vcombine.low %v2327_v16, %v2329_v23 }
 0x85a   :  { %v2344_v40 = vrot.slane %v2336_v0, %v3438_v11  ;;  %v2351_v33 = vrot.slane %v2337_v27, %v3438_v11 }
 0x85c   :  { %v2352_v37 = vcombine.low %v2344_v40, %v2351_v33  ;;  %v2353_v25 = vcombine.high %v2344_v40, %v2351_v33 }
 0x85e   :  { %v2360_v34 = vrot.slane %v2352_v37, %v3438_v11  ;;  %v2367_v43 = vrot.slane %v2353_v25, %v3438_v11 }
 0x860   :  { %v2370_v10 = vadd.f32 %v2360_v34, %v2169_v42  ;;  %v2371_v30 = vadd.f32 %v2367_v43, %v2171_v36 }
 0x862   :  { %v2609_v31 = vmul.f32 -1.442695, %v2370_v10  ;;  %v2610_v21 = vmul.f32 -1.442695, %v2371_v30  ;;  %v2386_v35 = vrot.slane %v2370_v10, 1  ;;  %v2387_v28 = vrot.slane %v2371_v30, 1 }
 0x863   :  { %v2408_v45 = vrot.slane %v2370_v10, 3  ;;  %v2409_v29 = vrot.slane %v2371_v30, 3  ;;  %v2402_v41 = vrot.slane %v2370_v10, 2  ;;  %v2403_v46 = vrot.slane %v2371_v30, 2 }
 0x864   :  { %2902 = vpow2.f32 %v2609_v31  ;;  %v2611_v32 = vmul.f32 -1.442695, %v2386_v35  ;;  %v2612_v39 = vmul.f32 -1.442695, %v2387_v28 }
 0x865   :  { %2904 = vpow2.f32 %v2610_v21  ;;  %v2613_v47 = vmul.f32 -1.442695, %v2408_v45  ;;  %v2614_v48 = vmul.f32 -1.442695, %v2409_v29 }
 0x866   :  { %2906 = vpow2.f32 %v2611_v32 }
 0x867   :  { %2908 = vpow2.f32 %v2612_v39 }
 0x868   :  { %2910 = vtanh.f32 %v2402_v41 }
 0x869   :  { %2912 = vtanh.f32 %v2403_v46 }
 0x86a   :  { %2914 = vpow2.f32 %v2613_v47 }
 0x86b   :  { %2916 = vpow2.f32 %v2614_v48 }
 0x871   :  { %v2903_v49 = vpop.eup %2902 }
 0x872   :  { %v2905_v50 = vpop.eup %2904  ;;  %v2378_v51 = vadd.f32 1.0, %v2903_v49 }
 0x873   :  { %v2907_v52 = vpop.eup %2906  ;;  %v2379_v53 = vadd.f32 1.0, %v2905_v50 }
 0x874   :  { %v2909_v54 = vpop.eup %2908  ;;  %2918 = vrcp.f32 %v2378_v51  ;;  %v2396_v55 = vadd.f32 1.0, %v2907_v52 }
 0x875   :  { %2920 = vrcp.f32 %v2379_v53  ;;  %v2397_v56 = vadd.f32 1.0, %v2909_v54  ;;  %v2911_v59 = vpop.eup %2910 }
 0x876   :  { %2922 = vrcp.f32 %v2396_v55  ;;  %v2913_v61 = vpop.eup %2912 }
 0x877   :  { %2924 = vrcp.f32 %v2397_v56  ;;  %v2915_v63 = vpop.eup %2914 }
 0x878   :  { %v2917_v5 = vpop.eup %2916  ;;  %v2418_v44 = vadd.f32 1.0, %v2915_v63 }
 0x879   :  { %v2419_v38 = vadd.f32 1.0, %v2917_v5 }
 0x87a   :  { %2926 = vrcp.f32 %v2418_v44 }
 0x87b   :  { %2928 = vrcp.f32 %v2419_v38 }
 0x881   :  { %v2919_v24 = vpop.eup %2918 }
 0x882   :  { %v2921_v14 = vpop.eup %2920  ;;  %v2426_v8 = vmul.f32 %v2919_v24, %v2911_v59 }
 0x883   :  { %v2923_v3 = vpop.eup %2922  ;;  %v2427_v7 = vmul.f32 %v2921_v14, %v2913_v61 }
 0x884   :  { %v2925_v15 = vpop.eup %2924  ;;  %v2424_v62 = vmul.f32 %v2923_v3, %v4051_v57 }
 0x885   :  { %v2425_v17 = vmul.f32 %v2925_v15, %v4053_v58  ;;  %v2615_v58 = vld [vmem:[%s4142_s5] ss:$0 sm:$0xff] }
 0x886   :  { %v2428_v6 = vadd.f32 %v2426_v8, %v2424_v62 }
 0x887   :  { %v2429_v9 = vadd.f32 %v2427_v7, %v2425_v17  ;;  %v2927_v60 = vpop.eup %2926 }
 0x888   :  { %2930 = vtanh.f32 %v2428_v6  ;;  %v2929_v2 = vpop.eup %2928 }
 0x889   :  { %2932 = vtanh.f32 %v2429_v9 }
 0x895   :  { %v2931_v22 = vpop.eup %2930 }
 0x896   :  { %v2933_v26 = vpop.eup %2932  ;;  %v2432_v19 = vmul.f32 %v2931_v22, %v2927_v60 }
 0x897   :  { %v2433_v1 = vmul.f32 %v2933_v26, %v2929_v2 }
 0x899   :  { %v2459_v20 = vcombine.low %v2432_v19, %v2433_v1 }
 0x89b   :  { %v2466_v4 = vrot.slane %v2459_v20, %v3438_v11 }
 0x89d   :  { %v2473_v57 = vrot.slane %v2466_v4, %v3438_v11 }
 0x89f   :  { %2666 = vmatmul.mubr.f32.vlgmr.msra.gmra.mxu0 %v2473_v57 }
 0x95f   :  { %v2541_v12 = vpop.f32.mrf.mxu0 }
 0x960   :  { %v2542_v13 = vadd.f32 %v2615_v58, %v2541_v12 }
 0x961   :  { %v2667_v16 = vpop.f32.mrf.mxu0 }
 0x962   :  { %2546 = vst.msk [vmem:[#allocation8] sm:$0x3] %vm2545_vm2, %v2542_v13 }
 0x963   :  { %3049 = shalt.err (!%p3046_p0)
}
 0x964   :  { %2556 = dma.vmem_to_hbm [thread:$0]  %s2554_s21, 32, %s4143_s6, [#allocation5]  }
 0x965   :  { %3062 = dma.done.wait [#allocation5], 32  }
 0x966   :  { %3063 = vsyncadd [#allocation5], 4294967264 }
 0x967   :  { %2560 = vsyncpa [#allocation4], 1 }
 0x968   :  { %2561 = vsyncpa [#allocation7], 1 }
 0x969   :  { %2562 = vsyncpa [#allocation5], 1 }

</bundles_post_ra>
